<compile_context>
chip_gen: v7x
topology: tpu7x:2x2x1
jax: 0.10.0
libtpu: 0.0.40
codegen_flags: <defaults>
</compile_context>

<pallas_src>
import jax
import jax.numpy as jnp
from jax.experimental import pallas as pl
from jax.experimental.pallas import tpu as pltpu


def _round_up(n: int, m: int) -> int:
    return ((n + m - 1) // m) * m


def dqn_mlp_kernel(x_ref,
                   w1_ref, b1_ref,
                   w2_ref, b2_ref,
                   w3_ref, b3_ref,
                   w4_ref, b4_ref,
                   o_ref):
    # One (TB, IN_PAD) batch tile per grid step; weights/biases are
    # VMEM-resident across the batch loop (constant block index).
    x = x_ref[...]                      # f32 (TB, IN_PAD)

    # Hoist bias reads once (no re-reads / re-broadcasts later).
    b1 = b1_ref[...]
    b2 = b2_ref[...]
    b3 = b3_ref[...]
    b4 = b4_ref[...]

    # bf16 matmul inputs + bf16 weights, f32 MXU accumulation.
    # Bias add / ReLU stay in f32 (v5e VPU has no bf16 path).
    h = jnp.dot(x.astype(jnp.bfloat16), w1_ref[...],
                preferred_element_type=jnp.float32) + b1
    h = jnp.maximum(h, 0.0)

    h = jnp.dot(h.astype(jnp.bfloat16), w2_ref[...],
                preferred_element_type=jnp.float32) + b2
    h = jnp.maximum(h, 0.0)

    h = jnp.dot(h.astype(jnp.bfloat16), w3_ref[...],
                preferred_element_type=jnp.float32) + b3
    h = jnp.maximum(h, 0.0)

    y = jnp.dot(h.astype(jnp.bfloat16), w4_ref[...],
                preferred_element_type=jnp.float32) + b4

    # Lane-dense (TB, OUT_PAD=128) store; wrapper slices to action_dim.
    o_ref[...] = y.astype(o_ref.dtype)


def dqn_forward(x, params, *, batch_tile: int = 256):
    """params = (w1, b1, w2, b2, w3, b3, w4, b4), weights in (in, out) layout,
    f32. Returns (B, action_dim) f32 Q-values."""
    w1, b1, w2, b2, w3, b3, w4, b4 = params
    B, state_dim = x.shape
    hidden_dim = w1.shape[1]
    action_dim = w4.shape[1]

    TB = batch_tile
    IN_PAD = _round_up(max(state_dim, 128), 128)
    OUT_PAD = _round_up(max(action_dim, 128), 128)
    B_PAD = _round_up(max(B, TB), TB)

    # Lane-dense padding of the input features and output columns; zero pad
    # rows of w1 / cols of w4 so the math is unchanged.
    x_p = jnp.pad(x, ((0, B_PAD - B), (0, IN_PAD - state_dim)))
    w1_p = jnp.pad(w1, ((0, IN_PAD - state_dim), (0, 0))).astype(jnp.bfloat16)
    w2_b = w2.astype(jnp.bfloat16)
    w3_b = w3.astype(jnp.bfloat16)
    w4_p = jnp.pad(w4, ((0, 0), (0, OUT_PAD - action_dim))).astype(jnp.bfloat16)
    b4_p = jnp.pad(b4, ((0, 0), (0, OUT_PAD - action_dim)))

    def const_spec(arr):
        nd = arr.ndim
        return pl.BlockSpec(arr.shape, lambda i, _n=nd: (0,) * _n)

    out = pl.pallas_call(
        dqn_mlp_kernel,
        out_shape=jax.ShapeDtypeStruct((B_PAD, OUT_PAD), jnp.float32),
        grid_spec=pltpu.PrefetchScalarGridSpec(
            num_scalar_prefetch=0,
            grid=(B_PAD // TB,),
            in_specs=[
                pl.BlockSpec((TB, IN_PAD), lambda i: (i, 0)),
                const_spec(w1_p), const_spec(b1),
                const_spec(w2_b), const_spec(b2),
                const_spec(w3_b), const_spec(b3),
                const_spec(w4_p), const_spec(b4_p),
            ],
            out_specs=pl.BlockSpec((TB, OUT_PAD), lambda i: (i, 0)),
        ),
        compiler_params=pltpu.CompilerParams(
            # Batch tiles are independent -> shard across both TCs on v7x.
            dimension_semantics=("parallel",),
        ),
    )(x_p, w1_p, b1, w2_b, b2, w3_b, b3, w4_p, b4_p)

    return out[:B, :action_dim]


def init_params(key, state_dim, action_dim, hidden_dim):
    """Deterministic init mirroring nn.Linear's U(-1/sqrt(fan_in), 1/sqrt(fan_in)).
    Weights stored as (in_features, out_features), f32."""
    dims = [(state_dim, hidden_dim),
            (hidden_dim, hidden_dim),
            (hidden_dim, hidden_dim),
            (hidden_dim, action_dim)]
    params = []
    for (fan_in, fan_out) in dims:
        key, kw, kb = jax.random.split(key, 3)
        bound = 1.0 / jnp.sqrt(float(fan_in))
        w = jax.random.uniform(kw, (fan_in, fan_out), jnp.float32, -bound, bound)
        b = jax.random.uniform(kb, (1, fan_out), jnp.float32, -bound, bound)
        params += [w, b]
    return tuple(params)


def reference_forward(x, params):
    """JAX reference with the same bf16-input / f32-accumulate numerics."""
    w1, b1, w2, b2, w3, b3, w4, b4 = params
    bf = lambda a: a.astype(jnp.bfloat16)
    dot = lambda a, b: jnp.dot(bf(a), bf(b), preferred_element_type=jnp.float32)
    h = jnp.maximum(dot(x, w1) + b1, 0.0)
    h = jnp.maximum(dot(h, w2) + b2, 0.0)
    h = jnp.maximum(dot(h, w3) + b3, 0.0)
    return dot(h, w4) + b4


if __name__ == "__main__":
    # Shapes consistent with the module (state_dim=32, hidden=128 default,
    # action_dim=8); training-style batch so the MXU M-dimension is filled.
    B, state_dim, action_dim, hidden_dim = 512, 32, 8, 128

    key = jax.random.PRNGKey(0)
    key, kx = jax.random.split(key)
    x = jax.random.normal(kx, (B, state_dim), jnp.float32)

    params = init_params(key, state_dim, action_dim, hidden_dim)

    out = dqn_forward(x, params)
    out = jax.block_until_ready(out)

    ref = reference_forward(x, params)
    assert out.shape == (B, action_dim)
    assert jnp.allclose(out, ref, atol=1e-3, rtol=1e-3), "mismatch vs. JAX reference"

    print("KERNEL_OK")
</pallas_src>

<mosaic_0001>
module attributes {stable_mosaic.version = 11 : i64} {
  func.func @dqn_mlp_kernel(%arg0: i32, %arg1: memref<256x128xf32, #tpu.memory_space<vmem>>, %arg2: memref<128x128xbf16, #tpu.memory_space<vmem>>, %arg3: memref<1x128xf32, #tpu.memory_space<vmem>>, %arg4: memref<128x128xbf16, #tpu.memory_space<vmem>>, %arg5: memref<1x128xf32, #tpu.memory_space<vmem>>, %arg6: memref<128x128xbf16, #tpu.memory_space<vmem>>, %arg7: memref<1x128xf32, #tpu.memory_space<vmem>>, %arg8: memref<128x128xbf16, #tpu.memory_space<vmem>>, %arg9: memref<1x128xf32, #tpu.memory_space<vmem>>, %arg10: memref<256x128xf32, #tpu.memory_space<vmem>>) attributes {dimension_semantics = [#tpu.dimension_semantics<parallel>], iteration_bounds = array<i64: 2>, scalar_prefetch = 0 : i64, scratch_operands = 0 : i64, tpu.core_type = #tpu.core_type<tc>, window_params = [{transform_indices = @transform_0, window_bounds = array<i64: 256, 128>}, {pipeline_mode = #tpu.pipeline_mode<synchronous>, transform_indices = @transform_1, window_bounds = array<i64: 128, 128>}, {pipeline_mode = #tpu.pipeline_mode<synchronous>, transform_indices = @transform_2, window_bounds = array<i64: 1, 128>}, {pipeline_mode = #tpu.pipeline_mode<synchronous>, transform_indices = @transform_3, window_bounds = array<i64: 128, 128>}, {pipeline_mode = #tpu.pipeline_mode<synchronous>, transform_indices = @transform_4, window_bounds = array<i64: 1, 128>}, {pipeline_mode = #tpu.pipeline_mode<synchronous>, transform_indices = @transform_5, window_bounds = array<i64: 128, 128>}, {pipeline_mode = #tpu.pipeline_mode<synchronous>, transform_indices = @transform_6, window_bounds = array<i64: 1, 128>}, {pipeline_mode = #tpu.pipeline_mode<synchronous>, transform_indices = @transform_7, window_bounds = array<i64: 128, 128>}, {pipeline_mode = #tpu.pipeline_mode<synchronous>, transform_indices = @transform_8, window_bounds = array<i64: 1, 128>}, {transform_indices = @transform_9, window_bounds = array<i64: 256, 128>}]} {
    %c0 = arith.constant 0 : index
    %c0_0 = arith.constant 0 : index
    %0 = vector.load %arg1[%c0, %c0_0] : memref<256x128xf32, #tpu.memory_space<vmem>>, vector<256x128xf32>
    %c0_1 = arith.constant 0 : index
    %c0_2 = arith.constant 0 : index
    %1 = vector.load %arg3[%c0_1, %c0_2] : memref<1x128xf32, #tpu.memory_space<vmem>>, vector<1x128xf32>
    %c0_3 = arith.constant 0 : index
    %c0_4 = arith.constant 0 : index
    %2 = vector.load %arg5[%c0_3, %c0_4] : memref<1x128xf32, #tpu.memory_space<vmem>>, vector<1x128xf32>
    %c0_5 = arith.constant 0 : index
    %c0_6 = arith.constant 0 : index
    %3 = vector.load %arg7[%c0_5, %c0_6] : memref<1x128xf32, #tpu.memory_space<vmem>>, vector<1x128xf32>
    %c0_7 = arith.constant 0 : index
    %c0_8 = arith.constant 0 : index
    %4 = vector.load %arg9[%c0_7, %c0_8] : memref<1x128xf32, #tpu.memory_space<vmem>>, vector<1x128xf32>
    %5 = arith.truncf %0 : vector<256x128xf32> to vector<256x128xbf16>
    %c0_9 = arith.constant 0 : index
    %c0_10 = arith.constant 0 : index
    %6 = vector.load %arg2[%c0_9, %c0_10] : memref<128x128xbf16, #tpu.memory_space<vmem>>, vector<128x128xbf16>
    %cst = arith.constant dense<0.000000e+00> : vector<256x128xf32>
    %7 = tpu.matmul %5, %6, %cst {dimension_numbers = #tpu.dot_dimension_numbers<[1], [0], [0], [1], [0, 0, 1, 1], [], []>} : vector<256x128xbf16>, vector<128x128xbf16>, vector<256x128xf32> -> vector<256x128xf32>
    %8 = vector.broadcast %1 : vector<1x128xf32> to vector<256x128xf32>
    %9 = arith.addf %7, %8 : vector<256x128xf32>
    %cst_11 = arith.constant 0.000000e+00 : f32
    %10 = vector.broadcast %cst_11 : f32 to vector<256x128xf32>
    %11 = arith.maximumf %9, %10 : vector<256x128xf32>
    %12 = arith.truncf %11 : vector<256x128xf32> to vector<256x128xbf16>
    %c0_12 = arith.constant 0 : index
    %c0_13 = arith.constant 0 : index
    %13 = vector.load %arg4[%c0_12, %c0_13] : memref<128x128xbf16, #tpu.memory_space<vmem>>, vector<128x128xbf16>
    %cst_14 = arith.constant dense<0.000000e+00> : vector<256x128xf32>
    %14 = tpu.matmul %12, %13, %cst_14 {dimension_numbers = #tpu.dot_dimension_numbers<[1], [0], [0], [1], [0, 0, 1, 1], [], []>} : vector<256x128xbf16>, vector<128x128xbf16>, vector<256x128xf32> -> vector<256x128xf32>
    %15 = vector.broadcast %2 : vector<1x128xf32> to vector<256x128xf32>
    %16 = arith.addf %14, %15 : vector<256x128xf32>
    %cst_15 = arith.constant 0.000000e+00 : f32
    %17 = vector.broadcast %cst_15 : f32 to vector<256x128xf32>
    %18 = arith.maximumf %16, %17 : vector<256x128xf32>
    %19 = arith.truncf %18 : vector<256x128xf32> to vector<256x128xbf16>
    %c0_16 = arith.constant 0 : index
    %c0_17 = arith.constant 0 : index
    %20 = vector.load %arg6[%c0_16, %c0_17] : memref<128x128xbf16, #tpu.memory_space<vmem>>, vector<128x128xbf16>
    %cst_18 = arith.constant dense<0.000000e+00> : vector<256x128xf32>
    %21 = tpu.matmul %19, %20, %cst_18 {dimension_numbers = #tpu.dot_dimension_numbers<[1], [0], [0], [1], [0, 0, 1, 1], [], []>} : vector<256x128xbf16>, vector<128x128xbf16>, vector<256x128xf32> -> vector<256x128xf32>
    %22 = vector.broadcast %3 : vector<1x128xf32> to vector<256x128xf32>
    %23 = arith.addf %21, %22 : vector<256x128xf32>
    %cst_19 = arith.constant 0.000000e+00 : f32
    %24 = vector.broadcast %cst_19 : f32 to vector<256x128xf32>
    %25 = arith.maximumf %23, %24 : vector<256x128xf32>
    %26 = arith.truncf %25 : vector<256x128xf32> to vector<256x128xbf16>
    %c0_20 = arith.constant 0 : index
    %c0_21 = arith.constant 0 : index
    %27 = vector.load %arg8[%c0_20, %c0_21] : memref<128x128xbf16, #tpu.memory_space<vmem>>, vector<128x128xbf16>
    %cst_22 = arith.constant dense<0.000000e+00> : vector<256x128xf32>
    %28 = tpu.matmul %26, %27, %cst_22 {dimension_numbers = #tpu.dot_dimension_numbers<[1], [0], [0], [1], [0, 0, 1, 1], [], []>} : vector<256x128xbf16>, vector<128x128xbf16>, vector<256x128xf32> -> vector<256x128xf32>
    %29 = vector.broadcast %4 : vector<1x128xf32> to vector<256x128xf32>
    %30 = arith.addf %28, %29 : vector<256x128xf32>
    %c0_23 = arith.constant 0 : index
    %c0_24 = arith.constant 0 : index
    %31 = vector.load %arg10[%c0_23, %c0_24] : memref<256x128xf32, #tpu.memory_space<vmem>>, vector<256x128xf32>
    tpu.vector_store %arg10[%c0_23, %c0_24], %30 {strides = array<i32>} : memref<256x128xf32, #tpu.memory_space<vmem>>, vector<256x128xf32>,
    return
  }
  func.func @transform_0(%arg0: i32) -> (i32, i32) {
    %c0_i32 = arith.constant 0 : i32
    %c0_i32_0 = arith.constant 0 : i32
    return %arg0, %c0_i32 : i32, i32
  }
  func.func @transform_1(%arg0: i32) -> (i32, i32) {
    %c0_i32 = arith.constant 0 : i32
    %c0_i32_0 = arith.constant 0 : i32
    %c0_i32_1 = arith.constant 0 : i32
    return %c0_i32, %c0_i32_0 : i32, i32
  }
  func.func @transform_2(%arg0: i32) -> (i32, i32) {
    %c0_i32 = arith.constant 0 : i32
    %c0_i32_0 = arith.constant 0 : i32
    %c0_i32_1 = arith.constant 0 : i32
    return %c0_i32, %c0_i32_0 : i32, i32
  }
  func.func @transform_3(%arg0: i32) -> (i32, i32) {
    %c0_i32 = arith.constant 0 : i32
    %c0_i32_0 = arith.constant 0 : i32
    %c0_i32_1 = arith.constant 0 : i32
    return %c0_i32, %c0_i32_0 : i32, i32
  }
  func.func @transform_4(%arg0: i32) -> (i32, i32) {
    %c0_i32 = arith.constant 0 : i32
    %c0_i32_0 = arith.constant 0 : i32
    %c0_i32_1 = arith.constant 0 : i32
    return %c0_i32, %c0_i32_0 : i32, i32
  }
  func.func @transform_5(%arg0: i32) -> (i32, i32) {
    %c0_i32 = arith.constant 0 : i32
    %c0_i32_0 = arith.constant 0 : i32
    %c0_i32_1 = arith.constant 0 : i32
    return %c0_i32, %c0_i32_0 : i32, i32
  }
  func.func @transform_6(%arg0: i32) -> (i32, i32) {
    %c0_i32 = arith.constant 0 : i32
    %c0_i32_0 = arith.constant 0 : i32
    %c0_i32_1 = arith.constant 0 : i32
    return %c0_i32, %c0_i32_0 : i32, i32
  }
  func.func @transform_7(%arg0: i32) -> (i32, i32) {
    %c0_i32 = arith.constant 0 : i32
    %c0_i32_0 = arith.constant 0 : i32
    %c0_i32_1 = arith.constant 0 : i32
    return %c0_i32, %c0_i32_0 : i32, i32
  }
  func.func @transform_8(%arg0: i32) -> (i32, i32) {
    %c0_i32 = arith.constant 0 : i32
    %c0_i32_0 = arith.constant 0 : i32
    %c0_i32_1 = arith.constant 0 : i32
    return %c0_i32, %c0_i32_0 : i32, i32
  }
  func.func @transform_9(%arg0: i32) -> (i32, i32) {
    %c0_i32 = arith.constant 0 : i32
    %c0_i32_0 = arith.constant 0 : i32
    return %arg0, %c0_i32 : i32, i32
  }
}

</mosaic_0001>

<bundles_post_ra>
// kernel: tpu_custom_call.1
= control target key start
LH: loop header
LB: loop body
LE: loop exit
PB: predicated region body
PF: predicated region fallthrough
CT: control target
= control target key end

     0   :  { %s2952_s0 = inlined_call_operand.hbm [shape: f32[512,128], index: 0, kind: input, shape index: {}]   ;;  %s2953_s1 = inlined_call_operand.hbm [shape: bf16[128,128], index: 1, kind: input, shape index: {}]   ;;  %s2954_s2 = inlined_call_operand.vmem [shape: f32[1,128], index: 2, kind: input, shape index: {}]   ;;  %s2955_s3 = inlined_call_operand.hbm [shape: bf16[128,128], index: 3, kind: input, shape index: {}]   ;;  %s2956_s4 = inlined_call_operand.vmem [shape: f32[1,128], index: 4, kind: input, shape index: {}]   ;;  %s2957_s5 = inlined_call_operand.hbm [shape: bf16[128,128], index: 5, kind: input, shape index: {}]   ;;  %s2958_s6 = inlined_call_operand.vmem [shape: f32[1,128], index: 6, kind: input, shape index: {}]   ;;  %s2959_s7 = inlined_call_operand.hbm [shape: bf16[128,128], index: 7, kind: input, shape index: {}]   ;;  %s2960_s8 = inlined_call_operand.vmem [shape: f32[1,128], index: 8, kind: input, shape index: {}]   ;;  %s2961_s9 = inlined_call_operand.hbm [shape: f32[512,128], index: 9, kind: output, shape index: {}]  }
   0x1   :  { %2968 = sst [smem:[#allocation18_spill]] %s2961_s9 }
   0x2   :  { %14 = vsyncpa [#allocation3], 0 }
   0x3   :  { %16 = vsyncpa [#allocation3 + $0x1], 0 }
   0x4   :  { %17 = vsyncpa [#allocation6], 0 }
   0x5   :  { %18 = vsyncpa [#allocation9], 0 }
   0x6   :  { %19 = vsyncpa [#allocation4], 0 }
   0x7   :  { %21 = vsyncpa [#allocation4 + $0x1], 0  ;;  %s2442_s30 = smov 0   ;;  %s2444_s10 = smov 0  }
   0x8   :  { %s2446_s11 = smov 0   ;;  %s2448_s12 = smov 0  }
   0x9 LB: > { %2969 = sst [smem:[#allocation16_spill]] %s2366_s30  ;;  %s2463_s13 = sadd.s32 4294967295, %s2378_s12   ;;  %s2378_s12 = sphi %s2448_s12, %s2993_s12   ;;  %s2374_s11 = sphi %s2446_s11, %s2992_s11   ;;  %s2370_s10 = sphi %s2444_s10, %s2991_s10   ;;  %s2366_s30 = sphi %s2442_s30, %s2990_s30  }
   0xa   : > { %s1689_s14 = sadd.s32 4294967294, %s2378_s12   ;;  %p47_p0 = scmp.ne.s32.totalorder %s2370_s10, %s2366_s30 }
   0xb   : > { %p2962_p1 = scmp.eq.s32.totalorder %s2463_s13, 0  ;;  %p245_p3 = scmp.eq.s32.totalorder %s1689_s14, 1 }
   0xc   : > { %p1690_p5 = scmp.ge.s32.totalorder %s2378_s12, 1  ;;  %p252_p7 = scmp.lt.s32.totalorder %s2378_s12, 3 }
   0xd   : > { %p2472_p4 = por %p2962_p1, %p47_p0  ;;  %p2477_p6 = por %p245_p3, %p47_p0 }
   0xe   : > { %p2482_p8 = pnand %p1690_p5, %p252_p7  ;;  %s2380_s18 = smov [#allocation5]  }
   0xf   : > { %s2970_s15 = scalar_select %p2472_p4, 1, 0 }
  0x10   : > { %s2971_s16 = scalar_select %p2477_p6, 1, 0 }
  0x11   : > { %s2973_s17 = scalar_select %p2482_p8, 1, 0 }
  0x12   : > { %2972 = sst [smem:[#allocation17_spill]] %s2971_s16  ;;  %s264_s19 = sshll.u32 %s2380_s18, 4  ;;  %s2486_s19 = int_to_ptr.vmem [resolvable:$true] %s264_s19 }
  0x13   : > { %p2057_p9 = pneg %p2482_p8  ;;  %s2381_s21 = smov [#allocation8]  }
  0x14   : > { %s296_s22 = sshll.u32 %s2381_s21, 4  ;;  %s2382_s23 = smov [#allocation7]   ;;  %s2497_s22 = int_to_ptr.vmem [resolvable:$true] %s296_s22 }
  0x15   : > { %p2493_p11 = pnand %p2057_p9, %p2962_p1  ;;  %s2499_s24 = sshll.u32 %s2382_s23, 4  ;;  %s281_s24 = int_to_ptr.vmem [resolvable:$true] %s2499_s24 }
  0x16   : > { %s2162_s27 = scalar_lea.hbm %s2953_s1, 1024 }
  0x17   : > { %p2163_p12 = scmp.ne.s32.totalorder %s2953_s1, %s2162_s27  ;;  %p2509_p13 = pneg %p2493_p11 }
  0x18   : > { %p2169_p5 = scmp.lt.u32.totalorder %s2162_s27, %s2953_s1 }
  0x19   : > { %p2165_p0 = pnand %p2509_p13, %p2163_p12 }
  0x1b   : > { %p2166_p3 = pneg %p2165_p0 }
  0x1d   : > { %p2171_p7 = pnand %p2169_p5, %p2166_p3 }
  0x1f   : > { %2174 = shalt.err (!%p2171_p7)
}
  0x20   : > { %s2175_s23 = scalar_lea.vmem %s2486_s19, 1024  ;;  %p2183_p2 = scmp.lt.s32.totalorder %s2486_s19, %s2486_s19 }
  0x21   : > { %p2176_p9 = scmp.ne.s32.totalorder %s2486_s19, %s2175_s23  ;;  %p2184_p6 = scmp.lt.s32.totalorder %s2175_s23, %s2175_s23 }
  0x23   : > { %p2178_p10 = pnand %p2176_p9, %p2509_p13  ;;  %p2185_p12 = por %p2184_p6, %p2183_p2 }
  0x25   : > { %p2179_p1 = pneg %p2178_p10 }
  0x27   : > { %p2186_p0 = pnand %p2185_p12, %p2179_p1 }
  0x29   : > { %2189 = shalt.err (!%p2186_p0)
}
  0x2a   : > { %s2383_s25 = smov 64   ;;  %s2384_s26 = smov 4  }
  0x2b   : > { %2060 = dma.hbm_to_vmem [thread:$0]  (!%p2493_p11), %s2953_s1, 1024, %s2486_s19, [#allocation6], %s2383_s25, %s2383_s25, %s2384_s26  }
  0x2c   : > { %s2190_s21 = scalar_lea.hbm %s2957_s5, 1024 }
  0x2d   : > { %p2191_p1 = scmp.ne.s32.totalorder %s2957_s5, %s2190_s21  ;;  %p2197_p10 = scmp.lt.u32.totalorder %s2190_s21, %s2957_s5 }
  0x2f   : > { %p2193_p2 = pnand %p2191_p1, %p2509_p13 }
  0x31   : > { %p2194_p6 = pneg %p2193_p2 }
  0x33   : > { %p2199_p3 = pnand %p2197_p10, %p2194_p6 }
  0x35   : > { %2202 = shalt.err (!%p2199_p3)
}
  0x36   : > { %s2203_s19 = scalar_lea.vmem %s2497_s22, 1024  ;;  %p2211_p12 = scmp.lt.s32.totalorder %s2497_s22, %s2497_s22 }
  0x37   : > { %p2204_p5 = scmp.ne.s32.totalorder %s2497_s22, %s2203_s19  ;;  %p2212_p0 = scmp.lt.s32.totalorder %s2203_s19, %s2203_s19 }
  0x39   : > { %p2206_p7 = pnand %p2204_p5, %p2509_p13  ;;  %p2213_p1 = por %p2212_p0, %p2211_p12 }
  0x3b   : > { %p2207_p9 = pneg %p2206_p7 }
  0x3d   : > { %p2214_p2 = pnand %p2213_p1, %p2207_p9 }
  0x3f   : > { %2217 = shalt.err (!%p2214_p2)
}
  0x40   : > { %2066 = dma.hbm_to_vmem [thread:$0]  (!%p2493_p11), %s2957_s5, 1024, %s2497_s22, [#allocation9], %s2383_s25, %s2383_s25, %s2384_s26  }
  0x41   : > { %s2218_s28 = scalar_lea.hbm %s2955_s3, 1024 }
  0x42   : > { %p2219_p6 = scmp.ne.s32.totalorder %s2955_s3, %s2218_s28  ;;  %p2225_p5 = scmp.lt.u32.totalorder %s2218_s28, %s2955_s3 }
  0x44   : > { %p2221_p10 = pnand %p2219_p6, %p2509_p13 }
  0x46   : > { %p2222_p3 = pneg %p2221_p10 }
  0x48   : > { %p2227_p7 = pnand %p2225_p5, %p2222_p3 }
  0x4a   : > { %2230 = shalt.err (!%p2227_p7)
}
  0x4b   : > { %s2231_s19 = scalar_lea.vmem %s281_s24, 1024  ;;  %p2239_p1 = scmp.lt.s32.totalorder %s281_s24, %s281_s24 }
  0x4c   : > { %p2232_p9 = scmp.ne.s32.totalorder %s281_s24, %s2231_s19  ;;  %p2240_p2 = scmp.lt.s32.totalorder %s2231_s19, %s2231_s19 }
  0x4e   : > { %p2234_p12 = pnand %p2232_p9, %p2509_p13  ;;  %p2241_p4 = por %p2240_p2, %p2239_p1 }
  0x50   : > { %p2235_p0 = pneg %p2234_p12 }
  0x52   : > { %p2242_p8 = pnand %p2241_p4, %p2235_p0 }
  0x54   : > { %2245 = shalt.err (!%p2242_p8)
}
  0x55   : > { %2063 = dma.hbm_to_vmem [thread:$0]  (!%p2493_p11), %s2955_s3, 1024, %s281_s24, [#allocation6], %s2383_s25, %s2383_s25, %s2384_s26  }
  0x56   : > { %s2385_s30 = smov [#allocation10]   ;;  %s2246_s29 = scalar_lea.hbm %s2959_s7, 1024 }
  0x57   : > { %s312_s16 = sshll.u32 %s2385_s30, 4  ;;  %p2247_p4 = scmp.ne.s32.totalorder %s2959_s7, %s2246_s29  ;;  %s313_s16 = int_to_ptr.vmem [resolvable:$true] %s312_s16 }
  0x58   : > { %p2253_p10 = scmp.lt.u32.totalorder %s2246_s29, %s2959_s7 }
  0x59   : > { %p2249_p8 = pnand %p2247_p4, %p2509_p13 }
  0x5b   : > { %p2250_p6 = pneg %p2249_p8 }
  0x5d   : > { %p2255_p3 = pnand %p2253_p10, %p2250_p6 }
  0x5f   : > { %2258 = shalt.err (!%p2255_p3)
}
  0x60   : > { %s2259_s24 = scalar_lea.vmem %s313_s16, 1024  ;;  %p2267_p12 = scmp.lt.s32.totalorder %s313_s16, %s313_s16 }
  0x61   : > { %p2260_p5 = scmp.ne.s32.totalorder %s313_s16, %s2259_s24  ;;  %p2268_p0 = scmp.lt.s32.totalorder %s2259_s24, %s2259_s24 }
  0x63   : > { %p2262_p7 = pnand %p2260_p5, %p2509_p13  ;;  %p2269_p1 = por %p2268_p0, %p2267_p12 }
  0x65   : > { %p2263_p9 = pneg %p2262_p7 }
  0x67   : > { %p2270_p2 = pnand %p2269_p1, %p2263_p9 }
  0x69   : > { %2273 = shalt.err (!%p2270_p2)
}
  0x6a   : > { %2069 = dma.hbm_to_vmem [thread:$0]  (!%p2493_p11), %s2959_s7, 1024, %s313_s16, [#allocation9], %s2383_s25, %s2383_s25, %s2384_s26  }
  0x6b   : > { %s2603_s14 = sadd.s32 1, %s2378_s12   ;;  %s34_s20 = sadd.s32 1, %s2374_s11 }
  0x6c   : > { %s31_s30 = ssub.s32 %s2378_s12, %s2603_s14  ;;  %p41_p13 = scmp.ne.s32.totalorder %s2374_s11, %s2370_s10 }
  0x6d   : > { %p32_p4 = scmp.eq.s32.totalorder %s31_s30, 0  ;;  %p42_p8 = scmp.eq.s32.totalorder %s2378_s12, 0 }
  0x6e   : > { %p2976_p6 = scmp.eq.s32.totalorder %s2463_s13, 1  ;;  %p2082_p3 = scmp.lt.s32.totalorder %s2378_s12, 2 }
  0x6f   : > { %s2619_s28 = scalar_select %p32_p4, %s2374_s11, %s34_s20  }
  0x70   : > { %p2613_p10 = por %p2976_p6, %p41_p13  ;;  %p43_p5 = por %p42_p8, %p41_p13 }
  0x71   : > { %s329_s29 = sand.u32 1, %s2374_s11   ;;  %s1747_s25 = sshll.u32 %s2378_s12, 12 }
  0x72   : > { %s1696_s18 = sshll.u32 %s329_s29, 8  ;;  %s2626_s21 = scalar_lea.hbm %s2952_s0, %s1747_s25 }
  0x73   : > { %s333_s23 = scalar_lea.vmem [#allocation2], %s1696_s18  ;;  %p2630_p11 = pnand %p2082_p3, %p43_p5 }
  0x74   : > { %s340_s19 = sshll.u32 %s333_s23, 4  ;;  %s2634_s22 = scalar_lea.sflag [#allocation3], %s329_s29  ;;  %s2628_s19 = int_to_ptr.vmem [resolvable:$true] %s340_s19 }
  0x75   : > { %s2274_s9 = scalar_lea.hbm %s2626_s21, 4096  ;;  %p2276_p9 = pneg %p2630_p11 }
  0x76   : > { %p2275_p7 = scmp.ne.s32.totalorder %s2626_s21, %s2274_s9  ;;  %s2279_s18 = scalar_lea.hbm %s2952_s0, 8192 }
  0x77   : > { %p2280_p1 = scmp.lt.u32.totalorder %s2626_s21, %s2952_s0  ;;  %p2281_p2 = scmp.lt.u32.totalorder %s2279_s18, %s2274_s9 }
  0x78   : > { %p2277_p12 = pnand %p2276_p9, %p2275_p7  ;;  %p2283_p4 = scmp.lt.u32.totalorder %s2274_s9, %s2626_s21 }
  0x79   : > { %p2282_p13 = por %p2281_p2, %p2280_p1 }
  0x7a   : > { %p2278_p0 = pneg %p2277_p12 }
  0x7b   : > { %p2284_p8 = por %p2283_p4, %p2282_p13 }
  0x7d   : > { %p2285_p6 = pnand %p2284_p8, %p2278_p0 }
  0x7f   : > { %2288 = shalt.err (!%p2285_p6)
}
  0x80   : > { %s2289_s29 = scalar_lea.vmem %s2628_s19, 4096  ;;  %s2386_s16 = smov [#allocation2]  }
  0x81   : > { %p2290_p3 = scmp.ne.s32.totalorder %s2628_s19, %s2289_s29  ;;  %s2294_s23 = sshll.u32 %s2386_s16, 4  ;;  %s2295_s23 = int_to_ptr.vmem [resolvable:$false] %s2294_s23 }
  0x82   : > { %s2296_s20 = scalar_lea.vmem %s2295_s23, 8192  ;;  %p2297_p12 = scmp.lt.s32.totalorder %s2628_s19, %s2295_s23 }
  0x83   : > { %p2292_p5 = pnand %p2290_p3, %p2276_p9  ;;  %p2298_p1 = scmp.lt.s32.totalorder %s2296_s20, %s2289_s29 }
  0x85   : > { %p2293_p7 = pneg %p2292_p5  ;;  %p2299_p2 = por %p2298_p1, %p2297_p12 }
  0x87   : > { %p2300_p13 = pnand %p2299_p2, %p2293_p7 }
  0x89   : > { %2303 = shalt.err (!%p2300_p13)
}
  0x8a   : > { %s2387_s9 = smov 128   ;;  %s2388_s30 = smov 8  }
  0x8b   : > { %2073 = dma.hbm_to_vmem [thread:$0]  (!%p2630_p11), %s2626_s21, 4096, %s2628_s19, %s2634_s22, %s2387_s9, %s2387_s9, %s2388_s30  }
  0x8c   : > { %p2979_p9 = scmp.ne.s32.totalorder %s2973_s17, 0 }
  0x8d   : > { %s2665_s18 = sand.u32 (!%p2979_p9), 1, %s2370_s10   ;;  %p2980_p0 = scmp.ne.s32.totalorder (!%p2979_p9), %s2970_s15, 0 }
  0x8e   : > { %352 = sbr.rel (%p2979_p9) target bundleno = 1144 (0x478), region = 56  ;;  %s1700_s25 = sshll.u32 (!%p2979_p9), %s2665_s18, 8 }
  0x8f   : > { %s355_s26 = scalar_lea.sflag (!%p2979_p9), [#allocation3], %s2665_s18  ;;  %s2671_s29 = scalar_lea.vmem (!%p2979_p9), [#allocation2], %s1700_s25 }
  0x95   : > { %2349 = dma.done.wait (%p2980_p0), %s355_s26, 4096  }
  0x96   : > { %2351 = vsyncadd (%p2980_p0), %s355_s26, 4294963200  ;;  %p2981_p11 = scmp.eq.s32.totalorder %s2463_s13, 0 }
  0x98   : > { %2353 = dma.done.wait (%p2981_p11), [#allocation6], 2048   ;;  %p2982_p4 = pmov %p2981_p11 }
  0x9a   : > { %2355 = vsyncadd (%p2982_p4), [#allocation6], 4294965248  ;;  %p2983_p8 = pmov %p2982_p4 }
  0x9b   : > { %p2984_p6 = pmov %p2982_p4 }
  0x9c   : > { %2357 = dma.done.wait (%p2983_p8), [#allocation9], 2048  }
  0x9d   : > { %2359 = vsyncadd (%p2984_p6), [#allocation9], 4294965248  ;;  %v2130_v0 = vld [vmem:[#allocation5] sm:$0xff]   ;;  %v2131_v1 = vld [vmem:[#allocation5 + $0x8] sm:$0xff]   ;;  %s2837_s20 = scalar_lea.vmem [#allocation11], %s1700_s25  ;;  %s1748_s9 = sshll.u32 %s2463_s13, 12 }
  0x9e   : > { %1845 = vmatprep.subr.bf16.mxu0 %v2130_v0  ;;  %v2132_v2 = vld [vmem:[#allocation5 + $0x10] sm:$0xff]   ;;  %v2133_v3 = vld [vmem:[#allocation5 + $0x18] sm:$0xff]   ;;  %v412_v4 = vld [vmem:[%s2671_s29] sm:$0xff]  ;;  %s1578_s30 = sshll.u32 %s2837_s20, 4  ;;  %s1565_s13 = scalar_lea.sflag [#allocation4], %s2665_s18  ;;  %s2904_s30 = int_to_ptr.vmem [resolvable:$true] %s1578_s30 }
  0x9f   : > { %1846 = vmatpush3.bf16.msra.mxu0 %v2130_v0  ;;  %v413_v5 = vld [vmem:[%s2671_s29 + $0x8] sm:$0xff]  ;;  %v2134_v7 = vld [vmem:[#allocation5 + $0x20] sm:$0xff]   ;;  %v2136_v9 = vld [vmem:[#allocation5 + $0x30] sm:$0xff]   ;;  %s2304_s17 = scalar_lea.vmem %s2904_s30, 4096  ;;  %s2389_s21 = smov [#allocation11]  }
  0xa0   : > { %1847 = vmatprep.subr.bf16.mxu0 %v2131_v1  ;;  %v448_v6 = vpack.c.bf16 %v413_v5, %v412_v4  ;;  %v2135_v8 = vld [vmem:[#allocation5 + $0x28] sm:$0xff]   ;;  %v2138_v10 = vld [vmem:[#allocation7] sm:$0xff]   ;;  %v2140_v12 = vld [vmem:[#allocation7 + $0x10] sm:$0xff]   ;;  %p2305_p3 = scmp.ne.s32.totalorder %s2904_s30, %s2304_s17  ;;  %s2308_s19 = sshll.u32 %s2389_s21, 4  ;;  %s2309_s19 = int_to_ptr.vmem [resolvable:$false] %s2308_s19 }
  0xa1   : > { %v2139_v11 = vld [vmem:[#allocation7 + $0x8] sm:$0xff]   ;;  %1893 = vmatprep.subr.bf16.mxu1 %v2138_v10  ;;  %v2137_v13 = vld [vmem:[#allocation5 + $0x38] sm:$0xff]   ;;  %v414_v14 = vld [vmem:[%s2671_s29 + $0x10] sm:$0xff]  ;;  %s2310_s24 = scalar_lea.vmem %s2309_s19, 8192  ;;  %p2311_p12 = scmp.lt.s32.totalorder %s2904_s30, %s2309_s19 }
  0xa2   : > { %1861 = vmatprep.mubr.bf16.mxu0 %v448_v6  ;;  %1894 = vmatpush3.bf16.msra.mxu1 %v2138_v10  ;;  %v415_v15 = vld [vmem:[%s2671_s29 + $0x18] sm:$0xff]  ;;  %v416_v17 = vld [vmem:[%s2671_s29 + $0x20] sm:$0xff]  ;;  %v417_v18 = vld [vmem:[%s2671_s29 + $0x28] sm:$0xff]  ;;  %p2306_p5 = pnand %p2305_p3, %p2613_p10  ;;  %p2312_p1 = scmp.lt.s32.totalorder %s2310_s24, %s2304_s17 }
  0xa3   : > { %1848 = vmatpush3.bf16.msra.mxu0 %v2131_v1  ;;  %1895 = vmatprep.subr.bf16.mxu1 %v2139_v11  ;;  %v2141_v16 = vld [vmem:[#allocation7 + $0x18] sm:$0xff]   ;;  %v2142_v19 = vld [vmem:[#allocation7 + $0x20] sm:$0xff]   ;;  %v449_v20 = vpack.c.bf16 %v415_v15, %v414_v14  ;;  %v450_v21 = vpack.c.bf16 %v417_v18, %v416_v17  ;;  %v418_v22 = vld [vmem:[%s2671_s29 + $0x30] sm:$0xff] }
  0xa4   : > { %1849 = vmatprep.subr.bf16.mxu0 %v2132_v2  ;;  %v419_v23 = vld [vmem:[%s2671_s29 + $0x38] sm:$0xff]  ;;  %v2143_v24 = vld [vmem:[#allocation7 + $0x28] sm:$0xff]   ;;  %v420_v25 = vld [vmem:[%s2671_s29 + $0x40] sm:$0xff]  ;;  %p2307_p7 = pneg %p2306_p5  ;;  %p2313_p2 = por %p2312_p1, %p2311_p12 }
  0xa5   : > { %v421_v26 = vld [vmem:[%s2671_s29 + $0x48] sm:$0xff]  ;;  %v451_v27 = vpack.c.bf16 %v419_v23, %v418_v22  ;;  %v422_v29 = vld [vmem:[%s2671_s29 + $0x50] sm:$0xff]  ;;  %v423_v30 = vld [vmem:[%s2671_s29 + $0x58] sm:$0xff] }
  0xa6   : > { %1896 = vmatpush3.bf16.msra.mxu1 %v2139_v11  ;;  %v452_v28 = vpack.c.bf16 %v421_v26, %v420_v25  ;;  %v424_v31 = vld [vmem:[%s2671_s29 + $0x60] sm:$0xff]  ;;  %v425_v32 = vld [vmem:[%s2671_s29 + $0x68] sm:$0xff]  ;;  %v453_v33 = vpack.c.bf16 %v423_v30, %v422_v29  ;;  %v426_v35 = vld [vmem:[%s2671_s29 + $0x70] sm:$0xff]  ;;  %p2314_p13 = pnand %p2313_p2, %p2307_p7 }
  0xa7   : > { %1850 = vmatpush3.bf16.msra.mxu0 %v2132_v2  ;;  %1897 = vmatprep.subr.bf16.mxu1 %v2140_v12  ;;  %v454_v34 = vpack.c.bf16 %v425_v32, %v424_v31  ;;  %v427_v36 = vld [vmem:[%s2671_s29 + $0x78] sm:$0xff]  ;;  %v428_v37 = vld [vmem:[%s2671_s29 + $0x80] sm:$0xff]  ;;  %v429_v38 = vld [vmem:[%s2671_s29 + $0x88] sm:$0xff] }
  0xa8   : > { %1851 = vmatprep.subr.bf16.mxu0 %v2133_v3  ;;  %v455_v39 = vpack.c.bf16 %v427_v36, %v426_v35  ;;  %v456_v40 = vpack.c.bf16 %v429_v38, %v428_v37  ;;  %v430_v41 = vld [vmem:[%s2671_s29 + $0x90] sm:$0xff]  ;;  %v431_v42 = vld [vmem:[%s2671_s29 + $0x98] sm:$0xff]  ;;  %v432_v43 = vld [vmem:[%s2671_s29 + $0xa0] sm:$0xff] }
  0xa9   : > { %v433_v44 = vld [vmem:[%s2671_s29 + $0xa8] sm:$0xff]  ;;  %v457_v45 = vpack.c.bf16 %v431_v42, %v430_v41  ;;  %v434_v47 = vld [vmem:[%s2671_s29 + $0xb0] sm:$0xff]  ;;  %v435_v48 = vld [vmem:[%s2671_s29 + $0xb8] sm:$0xff] }
  0xaa   : > { %1898 = vmatpush3.bf16.msra.mxu1 %v2140_v12  ;;  %v458_v46 = vpack.c.bf16 %v433_v44, %v432_v43  ;;  %v436_v49 = vld [vmem:[%s2671_s29 + $0xc0] sm:$0xff]  ;;  %v437_v50 = vld [vmem:[%s2671_s29 + $0xc8] sm:$0xff]  ;;  %v459_v51 = vpack.c.bf16 %v435_v48, %v434_v47  ;;  %v438_v53 = vld [vmem:[%s2671_s29 + $0xd0] sm:$0xff] }
  0xab   : > { %1852 = vmatpush3.bf16.msra.mxu0 %v2133_v3  ;;  %1899 = vmatprep.subr.bf16.mxu1 %v2141_v16  ;;  %v460_v52 = vpack.c.bf16 %v437_v50, %v436_v49  ;;  %v439_v54 = vld [vmem:[%s2671_s29 + $0xd8] sm:$0xff]  ;;  %v440_v55 = vld [vmem:[%s2671_s29 + $0xe0] sm:$0xff]  ;;  %v441_v56 = vld [vmem:[%s2671_s29 + $0xe8] sm:$0xff] }
  0xac   : > { %1853 = vmatprep.subr.bf16.mxu0 %v2134_v7  ;;  %v461_v57 = vpack.c.bf16 %v439_v54, %v438_v53  ;;  %v462_v58 = vpack.c.bf16 %v441_v56, %v440_v55  ;;  %v442_v59 = vld [vmem:[%s2671_s29 + $0xf0] sm:$0xff]  ;;  %v443_v60 = vld [vmem:[%s2671_s29 + $0xf8] sm:$0xff]  ;;  %v2146_v0 = vld [vmem:[#allocation8] sm:$0xff]   ;;  %s2985_s29 = sld [smem:[#allocation18_spill]] }
  0xad   : > { %v463_v61 = vpack.c.bf16 %v443_v60, %v442_v59  ;;  %v2144_v62 = vld [vmem:[#allocation7 + $0x30] sm:$0xff]   ;;  %v2145_v63 = vld [vmem:[#allocation7 + $0x38] sm:$0xff]   ;;  %v2147_v1 = vld [vmem:[#allocation8 + $0x8] sm:$0xff]  }
  0xae   : > { %1900 = vmatpush3.bf16.msra.mxu1 %v2141_v16  ;;  %v2148_v2 = vld [vmem:[#allocation8 + $0x10] sm:$0xff]   ;;  %v2149_v3 = vld [vmem:[#allocation8 + $0x18] sm:$0xff]   ;;  %v2150_v4 = vld [vmem:[#allocation8 + $0x20] sm:$0xff]  }
  0xaf   : > { %1854 = vmatpush3.bf16.msra.mxu0 %v2134_v7  ;;  %1901 = vmatprep.subr.bf16.mxu1 %v2142_v19  ;;  %v2151_v5 = vld [vmem:[#allocation8 + $0x28] sm:$0xff]   ;;  %v2152_v6 = vld [vmem:[#allocation8 + $0x30] sm:$0xff]   ;;  %v2720_v7 = vld [vmem:[%s2954_s2] ss:$0 sm:$0xff] }
  0xb0   : > { %1855 = vmatprep.subr.bf16.mxu0 %v2135_v8 }
  0xb2   : > { %1902 = vmatpush3.bf16.msra.mxu1 %v2142_v19  ;;  %s2902_s15 = scalar_lea.hbm %s2985_s29, %s1748_s9 }
  0xb3   : > { %1856 = vmatpush3.bf16.msra.mxu0 %v2135_v8  ;;  %1903 = vmatprep.subr.bf16.mxu1 %v2143_v24 }
  0xb4   : > { %1857 = vmatprep.subr.bf16.mxu0 %v2136_v9 }
  0xb6   : > { %1904 = vmatpush3.bf16.msra.mxu1 %v2143_v24 }
  0xb7   : > { %1858 = vmatpush3.bf16.msra.mxu0 %v2136_v9  ;;  %1905 = vmatprep.subr.bf16.mxu1 %v2144_v62 }
  0xb8   : > { %1859 = vmatprep.subr.bf16.mxu0 %v2137_v13 }
  0xba   : > { %1906 = vmatpush3.bf16.msra.mxu1 %v2144_v62 }
  0xbb   : > { %1860 = vmatpush3.bf16.msra.mxu0 %v2137_v13  ;;  %1907 = vmatprep.subr.bf16.mxu1 %v2145_v63 }
  0xbc   : > { %1941 = vmatprep.subr.bf16.mxu0 %v2146_v0 }
  0xbe   : > { %1862 = vmatmul.mubr.bf16.vlgmr.msra.gmra.mrb[0].mxu0 %v449_v20  ;;  %1908 = vmatpush3.bf16.msra.mxu1 %v2145_v63 }
  0xbf   : > { %1865 = vmatprep.mubr.bf16.mxu0 %v450_v21  ;;  %1942 = vmatpush3.bf16.msra.mxu0 %v2146_v0 }
  0xc0   : > { %1943 = vmatprep.subr.bf16.mxu0 %v2147_v1 }
  0xc3   : > { %1944 = vmatpush3.bf16.msra.mxu0 %v2147_v1 }
  0xc4   : > { %1945 = vmatprep.subr.bf16.mxu0 %v2148_v2 }
  0xc6   : > { %1866 = vmatmul.mubr.bf16.gmra.mrb[4].mxu0 %v451_v27 }
  0xc7   : > { %1869 = vmatprep.mubr.bf16.mxu0 %v452_v28  ;;  %1946 = vmatpush3.bf16.msra.mxu0 %v2148_v2 }
  0xc8   : > { %1947 = vmatprep.subr.bf16.mxu0 %v2149_v3 }
  0xcb   : > { %1948 = vmatpush3.bf16.msra.mxu0 %v2149_v3 }
  0xcc   : > { %1949 = vmatprep.subr.bf16.mxu0 %v2150_v4 }
  0xce   : > { %1870 = vmatmul.mubr.bf16.gmra.mrb[8].mxu0 %v453_v33 }
  0xcf   : > { %1873 = vmatprep.mubr.bf16.mxu0 %v454_v34  ;;  %1950 = vmatpush3.bf16.msra.mxu0 %v2150_v4 }
  0xd0   : > { %1951 = vmatprep.subr.bf16.mxu0 %v2151_v5 }
  0xd3   : > { %1952 = vmatpush3.bf16.msra.mxu0 %v2151_v5 }
  0xd4   : > { %1953 = vmatprep.subr.bf16.mxu0 %v2152_v6 }
  0xd6   : > { %1874 = vmatmul.mubr.bf16.gmra.mrb[12].mxu0 %v455_v39 }
  0xd7   : > { %1877 = vmatprep.mubr.bf16.mxu0 %v456_v40  ;;  %1954 = vmatpush3.bf16.msra.mxu0 %v2152_v6 }
  0xde   : > { %1878 = vmatmul.mubr.bf16.gmra.mrb[16].mxu0 %v457_v45 }
  0xdf   : > { %1881 = vmatprep.mubr.bf16.mxu0 %v458_v46 }
  0xe6   : > { %1882 = vmatmul.mubr.bf16.gmra.mrb[20].mxu0 %v459_v51 }
  0xe7   : > { %1885 = vmatprep.mubr.bf16.mxu0 %v460_v52 }
  0xee   : > { %1886 = vmatmul.mubr.bf16.gmra.mrb[24].mxu0 %v461_v57 }
  0xef   : > { %1889 = vmatprep.mubr.bf16.mxu0 %v462_v58 }
  0xf6   : > { %1890 = vmatmul.mubr.bf16.gmra.mrb[28].mxu0 %v463_v61 }
 0x191   : > { %v1863_v8 = vpop.f32.mrb[0].mxu0 }
 0x192   : > { %v577_v9 = vadd.f32 %v1863_v8, %v2720_v7  ;;  %v568_v10 = vpop.f32.mrb[1].mxu0 }
 0x193   : > { %v569_v11 = vadd.f32 %v2720_v7, %v568_v10  ;;  %v1864_v12 = vpop.f32.mrb[2].mxu0 }
 0x194   : > { %v580_v13 = vadd.f32 %v1864_v12, %v2720_v7  ;;  %v571_v14 = vpop.f32.mrb[3].mxu0  ;;  %v697_v16 = vmax.f32 %v577_v9, 0.0 }
 0x195   : > { %v572_v15 = vadd.f32 %v2720_v7, %v571_v14  ;;  %v695_v18 = vmax.f32 %v569_v11, 0.0 }
 0x196   : > { %v698_v17 = vmax.f32 %v580_v13, 0.0 }
 0x197   : > { %v696_v19 = vmax.f32 %v572_v15, 0.0 }
 0x198   : > { %v728_v20 = vpack.c.bf16 %v698_v17, %v697_v16 }
 0x199   : > { %v1867_v21 = vpop.f32.mrb[4].mxu0  ;;  %v727_v22 = vpack.c.bf16 %v696_v19, %v695_v18 }
 0x19a   : > { %v593_v23 = vadd.f32 %v1867_v21, %v2720_v7  ;;  %v584_v24 = vpop.f32.mrb[5].mxu0 }
 0x19b   : > { %v585_v25 = vadd.f32 %v2720_v7, %v584_v24  ;;  %v1868_v26 = vpop.f32.mrb[6].mxu0  ;;  %1909 = vmatprep.mubr.bf16.mxu1 %v727_v22 }
 0x19c   : > { %v596_v27 = vadd.f32 %v1868_v26, %v2720_v7  ;;  %v587_v28 = vpop.f32.mrb[7].mxu0  ;;  %1910 = vmatmul.mubr.bf16.vlgmr.msra.gmra.mrb[0].mxu1 %v728_v20  ;;  %v701_v30 = vmax.f32 %v593_v23, 0.0 }
 0x19d   : > { %v588_v29 = vadd.f32 %v2720_v7, %v587_v28  ;;  %v699_v32 = vmax.f32 %v585_v25, 0.0 }
 0x19e   : > { %v702_v31 = vmax.f32 %v596_v27, 0.0 }
 0x19f   : > { %v700_v33 = vmax.f32 %v588_v29, 0.0 }
 0x1a0   : > { %v730_v34 = vpack.c.bf16 %v702_v31, %v701_v30 }
 0x1a1   : > { %v729_v35 = vpack.c.bf16 %v700_v33, %v699_v32  ;;  %v1871_v36 = vpop.f32.mrb[8].mxu0 }
 0x1a2   : > { %v609_v37 = vadd.f32 %v1871_v36, %v2720_v7  ;;  %v600_v38 = vpop.f32.mrb[9].mxu0 }
 0x1a3   : > { %v601_v39 = vadd.f32 %v2720_v7, %v600_v38  ;;  %v1872_v40 = vpop.f32.mrb[10].mxu0  ;;  %1913 = vmatprep.mubr.bf16.mxu1 %v729_v35 }
 0x1a4   : > { %v612_v41 = vadd.f32 %v1872_v40, %v2720_v7  ;;  %v603_v42 = vpop.f32.mrb[11].mxu0  ;;  %1914 = vmatmul.mubr.bf16.gmra.mrb[4].mxu1 %v730_v34  ;;  %v705_v44 = vmax.f32 %v609_v37, 0.0 }
 0x1a5   : > { %v604_v43 = vadd.f32 %v2720_v7, %v603_v42  ;;  %v703_v46 = vmax.f32 %v601_v39, 0.0 }
 0x1a6   : > { %v706_v45 = vmax.f32 %v612_v41, 0.0 }
 0x1a7   : > { %v704_v47 = vmax.f32 %v604_v43, 0.0 }
 0x1a8   : > { %v732_v48 = vpack.c.bf16 %v706_v45, %v705_v44 }
 0x1a9   : > { %v731_v49 = vpack.c.bf16 %v704_v47, %v703_v46  ;;  %v1875_v50 = vpop.f32.mrb[12].mxu0 }
 0x1aa   : > { %v625_v51 = vadd.f32 %v1875_v50, %v2720_v7  ;;  %v616_v52 = vpop.f32.mrb[13].mxu0 }
 0x1ab   : > { %v617_v53 = vadd.f32 %v2720_v7, %v616_v52  ;;  %v1876_v54 = vpop.f32.mrb[14].mxu0  ;;  %1917 = vmatprep.mubr.bf16.mxu1 %v731_v49 }
 0x1ac   : > { %v628_v55 = vadd.f32 %v1876_v54, %v2720_v7  ;;  %v619_v56 = vpop.f32.mrb[15].mxu0  ;;  %1918 = vmatmul.mubr.bf16.gmra.mrb[8].mxu1 %v732_v48  ;;  %v709_v58 = vmax.f32 %v625_v51, 0.0 }
 0x1ad   : > { %v620_v57 = vadd.f32 %v2720_v7, %v619_v56  ;;  %v707_v60 = vmax.f32 %v617_v53, 0.0 }
 0x1ae   : > { %v710_v59 = vmax.f32 %v628_v55, 0.0 }
 0x1af   : > { %v708_v61 = vmax.f32 %v620_v57, 0.0  ;;  %v2153_v57 = vld [vmem:[#allocation8 + $0x38] sm:$0xff]  }
 0x1b0   : > { %v734_v62 = vpack.c.bf16 %v710_v59, %v709_v58  ;;  %1955 = vmatprep.subr.bf16.mxu0 %v2153_v57  ;;  %v2154_v58 = vld [vmem:[#allocation10] sm:$0xff]   ;;  %v2155_v59 = vld [vmem:[#allocation10 + $0x8] sm:$0xff]  }
 0x1b1   : > { %v733_v63 = vpack.c.bf16 %v708_v61, %v707_v60  ;;  %v1879_v0 = vpop.f32.mrb[16].mxu0  ;;  %1956 = vmatpush3.bf16.msra.mxu0 %v2153_v57  ;;  %1989 = vmatprep.subr.bf16.mxu1 %v2154_v58  ;;  %v2156_v60 = vld [vmem:[#allocation10 + $0x10] sm:$0xff]   ;;  %v2158_v61 = vld [vmem:[#allocation10 + $0x20] sm:$0xff]  }
 0x1b2   : > { %v641_v1 = vadd.f32 %v1879_v0, %v2720_v7  ;;  %v632_v2 = vpop.f32.mrb[17].mxu0  ;;  %1990 = vmatpush3.bf16.msra.mxu1 %v2154_v58  ;;  %v2757_v0 = vld [vmem:[%s2956_s4] ss:$0 sm:$0xff] }
 0x1b3   : > { %v633_v3 = vadd.f32 %v2720_v7, %v632_v2  ;;  %v1880_v4 = vpop.f32.mrb[18].mxu0  ;;  %1921 = vmatprep.mubr.bf16.mxu1 %v733_v63  ;;  %1991 = vmatprep.subr.bf16.mxu1 %v2155_v59  ;;  %v2160_v63 = vld [vmem:[#allocation10 + $0x30] sm:$0xff]  }
 0x1b4   : > { %v644_v5 = vadd.f32 %v1880_v4, %v2720_v7  ;;  %v635_v6 = vpop.f32.mrb[19].mxu0  ;;  %1922 = vmatmul.mubr.bf16.gmra.mrb[12].mxu1 %v734_v62  ;;  %v713_v9 = vmax.f32 %v641_v1, 0.0  ;;  %v2159_v62 = vld [vmem:[#allocation10 + $0x28] sm:$0xff]  }
 0x1b5   : > { %v636_v8 = vadd.f32 %v2720_v7, %v635_v6  ;;  %v711_v11 = vmax.f32 %v633_v3, 0.0 }
 0x1b6   : > { %v714_v10 = vmax.f32 %v644_v5, 0.0  ;;  %1992 = vmatpush3.bf16.msra.mxu1 %v2155_v59 }
 0x1b7   : > { %v712_v12 = vmax.f32 %v636_v8, 0.0  ;;  %1993 = vmatprep.subr.bf16.mxu1 %v2156_v60 }
 0x1b8   : > { %v736_v13 = vpack.c.bf16 %v714_v10, %v713_v9 }
 0x1b9   : > { %v735_v14 = vpack.c.bf16 %v712_v12, %v711_v11  ;;  %v1883_v15 = vpop.f32.mrb[20].mxu0 }
 0x1ba   : > { %v657_v16 = vadd.f32 %v1883_v15, %v2720_v7  ;;  %v648_v17 = vpop.f32.mrb[21].mxu0  ;;  %1994 = vmatpush3.bf16.msra.mxu1 %v2156_v60 }
 0x1bb   : > { %v649_v18 = vadd.f32 %v2720_v7, %v648_v17  ;;  %v1884_v19 = vpop.f32.mrb[22].mxu0  ;;  %1925 = vmatprep.mubr.bf16.mxu1 %v735_v14 }
 0x1bc   : > { %v660_v20 = vadd.f32 %v1884_v19, %v2720_v7  ;;  %v651_v21 = vpop.f32.mrb[23].mxu0  ;;  %1926 = vmatmul.mubr.bf16.gmra.mrb[16].mxu1 %v736_v13  ;;  %v717_v23 = vmax.f32 %v657_v16, 0.0 }
 0x1bd   : > { %v652_v22 = vadd.f32 %v2720_v7, %v651_v21  ;;  %v715_v25 = vmax.f32 %v649_v18, 0.0 }
 0x1be   : > { %v718_v24 = vmax.f32 %v660_v20, 0.0 }
 0x1bf   : > { %v716_v26 = vmax.f32 %v652_v22, 0.0 }
 0x1c0   : > { %v738_v27 = vpack.c.bf16 %v718_v24, %v717_v23 }
 0x1c1   : > { %v737_v28 = vpack.c.bf16 %v716_v26, %v715_v25  ;;  %v1887_v29 = vpop.f32.mrb[24].mxu0 }
 0x1c2   : > { %v673_v30 = vadd.f32 %v1887_v29, %v2720_v7  ;;  %v664_v31 = vpop.f32.mrb[25].mxu0 }
 0x1c3   : > { %v665_v32 = vadd.f32 %v2720_v7, %v664_v31  ;;  %v1888_v33 = vpop.f32.mrb[26].mxu0  ;;  %1929 = vmatprep.mubr.bf16.mxu1 %v737_v28 }
 0x1c4   : > { %v676_v34 = vadd.f32 %v1888_v33, %v2720_v7  ;;  %v667_v35 = vpop.f32.mrb[27].mxu0  ;;  %1930 = vmatmul.mubr.bf16.gmra.mrb[20].mxu1 %v738_v27  ;;  %v721_v37 = vmax.f32 %v673_v30, 0.0 }
 0x1c5   : > { %v668_v36 = vadd.f32 %v2720_v7, %v667_v35  ;;  %v719_v39 = vmax.f32 %v665_v32, 0.0 }
 0x1c6   : > { %v722_v38 = vmax.f32 %v676_v34, 0.0 }
 0x1c7   : > { %v720_v40 = vmax.f32 %v668_v36, 0.0 }
 0x1c8   : > { %v740_v41 = vpack.c.bf16 %v722_v38, %v721_v37 }
 0x1c9   : > { %v739_v42 = vpack.c.bf16 %v720_v40, %v719_v39  ;;  %v1891_v43 = vpop.f32.mrb[28].mxu0 }
 0x1ca   : > { %v689_v44 = vadd.f32 %v1891_v43, %v2720_v7  ;;  %v680_v45 = vpop.f32.mrb[29].mxu0 }
 0x1cb   : > { %v681_v46 = vadd.f32 %v2720_v7, %v680_v45  ;;  %v1892_v47 = vpop.f32.mrb[30].mxu0  ;;  %1933 = vmatprep.mubr.bf16.mxu1 %v739_v42 }
 0x1cc   : > { %v692_v48 = vadd.f32 %v1892_v47, %v2720_v7  ;;  %v683_v49 = vpop.f32.mrb[31].mxu0  ;;  %1934 = vmatmul.mubr.bf16.gmra.mrb[24].mxu1 %v740_v41  ;;  %v725_v51 = vmax.f32 %v689_v44, 0.0 }
 0x1cd   : > { %v684_v50 = vadd.f32 %v2720_v7, %v683_v49  ;;  %v723_v53 = vmax.f32 %v681_v46, 0.0  ;;  %v2157_v7 = vld [vmem:[#allocation10 + $0x18] sm:$0xff]  }
 0x1ce   : > { %v726_v52 = vmax.f32 %v692_v48, 0.0  ;;  %1995 = vmatprep.subr.bf16.mxu1 %v2157_v7 }
 0x1cf   : > { %v724_v54 = vmax.f32 %v684_v50, 0.0  ;;  %1996 = vmatpush3.bf16.msra.mxu1 %v2157_v7 }
 0x1d0   : > { %v742_v55 = vpack.c.bf16 %v726_v52, %v725_v51  ;;  %1997 = vmatprep.subr.bf16.mxu1 %v2158_v61 }
 0x1d1   : > { %v741_v56 = vpack.c.bf16 %v724_v54, %v723_v53 }
 0x1d3   : > { %1937 = vmatprep.mubr.bf16.mxu1 %v741_v56  ;;  %1998 = vmatpush3.bf16.msra.mxu1 %v2158_v61 }
 0x1d4   : > { %1938 = vmatmul.mubr.bf16.gmra.mrb[28].mxu1 %v742_v55  ;;  %1999 = vmatprep.subr.bf16.mxu1 %v2159_v62 }
 0x1d7   : > { %2000 = vmatpush3.bf16.msra.mxu1 %v2159_v62 }
 0x1d8   : > { %2001 = vmatprep.subr.bf16.mxu1 %v2160_v63 }
 0x1db   : > { %2002 = vmatpush3.bf16.msra.mxu1 %v2160_v63 }
 0x26f   : > { %v1911_v1 = vpop.f32.mrb[0].mxu1 }
 0x270   : > { %v856_v2 = vadd.f32 %v1911_v1, %v2757_v0  ;;  %v847_v3 = vpop.f32.mrb[1].mxu1 }
 0x271   : > { %v848_v4 = vadd.f32 %v2757_v0, %v847_v3  ;;  %v1912_v5 = vpop.f32.mrb[2].mxu1 }
 0x272   : > { %v859_v6 = vadd.f32 %v1912_v5, %v2757_v0  ;;  %v850_v8 = vpop.f32.mrb[3].mxu1  ;;  %v976_v10 = vmax.f32 %v856_v2, 0.0 }
 0x273   : > { %v851_v9 = vadd.f32 %v2757_v0, %v850_v8  ;;  %v974_v12 = vmax.f32 %v848_v4, 0.0 }
 0x274   : > { %v977_v11 = vmax.f32 %v859_v6, 0.0 }
 0x275   : > { %v975_v13 = vmax.f32 %v851_v9, 0.0 }
 0x276   : > { %v1007_v14 = vpack.c.bf16 %v977_v11, %v976_v10 }
 0x277   : > { %v1006_v15 = vpack.c.bf16 %v975_v13, %v974_v12  ;;  %v1915_v16 = vpop.f32.mrb[4].mxu1 }
 0x278   : > { %v872_v17 = vadd.f32 %v1915_v16, %v2757_v0  ;;  %v863_v18 = vpop.f32.mrb[5].mxu1 }
 0x279   : > { %v864_v19 = vadd.f32 %v2757_v0, %v863_v18  ;;  %v1916_v20 = vpop.f32.mrb[6].mxu1  ;;  %1957 = vmatprep.mubr.bf16.mxu0 %v1006_v15 }
 0x27a   : > { %v875_v21 = vadd.f32 %v1916_v20, %v2757_v0  ;;  %v866_v22 = vpop.f32.mrb[7].mxu1  ;;  %1958 = vmatmul.mubr.bf16.vlgmr.msra.gmra.mrb[32].mxu0 %v1007_v14  ;;  %v980_v24 = vmax.f32 %v872_v17, 0.0 }
 0x27b   : > { %v867_v23 = vadd.f32 %v2757_v0, %v866_v22  ;;  %v978_v26 = vmax.f32 %v864_v19, 0.0 }
 0x27c   : > { %v981_v25 = vmax.f32 %v875_v21, 0.0 }
 0x27d   : > { %v979_v27 = vmax.f32 %v867_v23, 0.0 }
 0x27e   : > { %v1009_v28 = vpack.c.bf16 %v981_v25, %v980_v24 }
 0x27f   : > { %v1008_v29 = vpack.c.bf16 %v979_v27, %v978_v26  ;;  %v1919_v30 = vpop.f32.mrb[8].mxu1 }
 0x280   : > { %v888_v31 = vadd.f32 %v1919_v30, %v2757_v0  ;;  %v879_v32 = vpop.f32.mrb[9].mxu1 }
 0x281   : > { %v880_v33 = vadd.f32 %v2757_v0, %v879_v32  ;;  %v1920_v34 = vpop.f32.mrb[10].mxu1  ;;  %1961 = vmatprep.mubr.bf16.mxu0 %v1008_v29 }
 0x282   : > { %v891_v35 = vadd.f32 %v1920_v34, %v2757_v0  ;;  %v882_v36 = vpop.f32.mrb[11].mxu1  ;;  %1962 = vmatmul.mubr.bf16.gmra.mrb[36].mxu0 %v1009_v28  ;;  %v984_v38 = vmax.f32 %v888_v31, 0.0 }
 0x283   : > { %v883_v37 = vadd.f32 %v2757_v0, %v882_v36  ;;  %v982_v40 = vmax.f32 %v880_v33, 0.0 }
 0x284   : > { %v985_v39 = vmax.f32 %v891_v35, 0.0 }
 0x285   : > { %v983_v41 = vmax.f32 %v883_v37, 0.0 }
 0x286   : > { %v1011_v42 = vpack.c.bf16 %v985_v39, %v984_v38 }
 0x287   : > { %v1010_v43 = vpack.c.bf16 %v983_v41, %v982_v40  ;;  %v1923_v44 = vpop.f32.mrb[12].mxu1 }
 0x288   : > { %v904_v45 = vadd.f32 %v1923_v44, %v2757_v0  ;;  %v895_v46 = vpop.f32.mrb[13].mxu1 }
 0x289   : > { %v896_v47 = vadd.f32 %v2757_v0, %v895_v46  ;;  %v1924_v48 = vpop.f32.mrb[14].mxu1  ;;  %1965 = vmatprep.mubr.bf16.mxu0 %v1010_v43 }
 0x28a   : > { %v907_v49 = vadd.f32 %v1924_v48, %v2757_v0  ;;  %v898_v50 = vpop.f32.mrb[15].mxu1  ;;  %1966 = vmatmul.mubr.bf16.gmra.mrb[40].mxu0 %v1011_v42  ;;  %v988_v52 = vmax.f32 %v904_v45, 0.0 }
 0x28b   : > { %v899_v51 = vadd.f32 %v2757_v0, %v898_v50  ;;  %v986_v54 = vmax.f32 %v896_v47, 0.0 }
 0x28c   : > { %v989_v53 = vmax.f32 %v907_v49, 0.0 }
 0x28d   : > { %v987_v55 = vmax.f32 %v899_v51, 0.0  ;;  %v2161_v51 = vld [vmem:[#allocation10 + $0x38] sm:$0xff]  }
 0x28e   : > { %v1013_v56 = vpack.c.bf16 %v989_v53, %v988_v52  ;;  %2003 = vmatprep.subr.bf16.mxu1 %v2161_v51  ;;  %v2794_v52 = vld [vmem:[%s2958_s6] ss:$0 sm:$0xff] }
 0x28f   : > { %v1012_v57 = vpack.c.bf16 %v987_v55, %v986_v54  ;;  %v1927_v58 = vpop.f32.mrb[16].mxu1  ;;  %2004 = vmatpush3.bf16.msra.mxu1 %v2161_v51 }
 0x290   : > { %v920_v59 = vadd.f32 %v1927_v58, %v2757_v0  ;;  %v911_v60 = vpop.f32.mrb[17].mxu1 }
 0x291   : > { %v912_v7 = vadd.f32 %v2757_v0, %v911_v60  ;;  %v1928_v61 = vpop.f32.mrb[18].mxu1  ;;  %1969 = vmatprep.mubr.bf16.mxu0 %v1012_v57 }
 0x292   : > { %v923_v62 = vadd.f32 %v1928_v61, %v2757_v0  ;;  %v914_v63 = vpop.f32.mrb[19].mxu1  ;;  %1970 = vmatmul.mubr.bf16.gmra.mrb[44].mxu0 %v1013_v56  ;;  %v992_v2 = vmax.f32 %v920_v59, 0.0 }
 0x293   : > { %v915_v1 = vadd.f32 %v2757_v0, %v914_v63  ;;  %v990_v4 = vmax.f32 %v912_v7, 0.0 }
 0x294   : > { %v993_v3 = vmax.f32 %v923_v62, 0.0 }
 0x295   : > { %v991_v5 = vmax.f32 %v915_v1, 0.0 }
 0x296   : > { %v1015_v6 = vpack.c.bf16 %v993_v3, %v992_v2 }
 0x297   : > { %v1014_v8 = vpack.c.bf16 %v991_v5, %v990_v4  ;;  %v1931_v9 = vpop.f32.mrb[20].mxu1 }
 0x298   : > { %v936_v10 = vadd.f32 %v1931_v9, %v2757_v0  ;;  %v927_v11 = vpop.f32.mrb[21].mxu1 }
 0x299   : > { %v928_v12 = vadd.f32 %v2757_v0, %v927_v11  ;;  %v1932_v13 = vpop.f32.mrb[22].mxu1  ;;  %1973 = vmatprep.mubr.bf16.mxu0 %v1014_v8 }
 0x29a   : > { %v939_v14 = vadd.f32 %v1932_v13, %v2757_v0  ;;  %v930_v15 = vpop.f32.mrb[23].mxu1  ;;  %1974 = vmatmul.mubr.bf16.gmra.mrb[48].mxu0 %v1015_v6  ;;  %v996_v17 = vmax.f32 %v936_v10, 0.0 }
 0x29b   : > { %v931_v16 = vadd.f32 %v2757_v0, %v930_v15  ;;  %v994_v19 = vmax.f32 %v928_v12, 0.0 }
 0x29c   : > { %v997_v18 = vmax.f32 %v939_v14, 0.0 }
 0x29d   : > { %v995_v20 = vmax.f32 %v931_v16, 0.0 }
 0x29e   : > { %v1017_v21 = vpack.c.bf16 %v997_v18, %v996_v17 }
 0x29f   : > { %v1016_v22 = vpack.c.bf16 %v995_v20, %v994_v19  ;;  %v1935_v23 = vpop.f32.mrb[24].mxu1 }
 0x2a0   : > { %v952_v24 = vadd.f32 %v1935_v23, %v2757_v0  ;;  %v943_v25 = vpop.f32.mrb[25].mxu1 }
 0x2a1   : > { %v944_v26 = vadd.f32 %v2757_v0, %v943_v25  ;;  %v1936_v27 = vpop.f32.mrb[26].mxu1  ;;  %1977 = vmatprep.mubr.bf16.mxu0 %v1016_v22 }
 0x2a2   : > { %v955_v28 = vadd.f32 %v1936_v27, %v2757_v0  ;;  %v946_v29 = vpop.f32.mrb[27].mxu1  ;;  %1978 = vmatmul.mubr.bf16.gmra.mrb[52].mxu0 %v1017_v21  ;;  %v1000_v31 = vmax.f32 %v952_v24, 0.0 }
 0x2a3   : > { %v947_v30 = vadd.f32 %v2757_v0, %v946_v29  ;;  %v998_v33 = vmax.f32 %v944_v26, 0.0 }
 0x2a4   : > { %v1001_v32 = vmax.f32 %v955_v28, 0.0 }
 0x2a5   : > { %v999_v34 = vmax.f32 %v947_v30, 0.0 }
 0x2a6   : > { %v1019_v35 = vpack.c.bf16 %v1001_v32, %v1000_v31 }
 0x2a7   : > { %v1018_v36 = vpack.c.bf16 %v999_v34, %v998_v33  ;;  %v1939_v37 = vpop.f32.mrb[28].mxu1 }
 0x2a8   : > { %v968_v38 = vadd.f32 %v1939_v37, %v2757_v0  ;;  %v959_v39 = vpop.f32.mrb[29].mxu1 }
 0x2a9   : > { %v960_v40 = vadd.f32 %v2757_v0, %v959_v39  ;;  %v1940_v41 = vpop.f32.mrb[30].mxu1  ;;  %1981 = vmatprep.mubr.bf16.mxu0 %v1018_v36 }
 0x2aa   : > { %v971_v42 = vadd.f32 %v1940_v41, %v2757_v0  ;;  %v962_v43 = vpop.f32.mrb[31].mxu1  ;;  %1982 = vmatmul.mubr.bf16.gmra.mrb[56].mxu0 %v1019_v35  ;;  %v1004_v45 = vmax.f32 %v968_v38, 0.0 }
 0x2ab   : > { %v963_v44 = vadd.f32 %v2757_v0, %v962_v43  ;;  %v1002_v47 = vmax.f32 %v960_v40, 0.0 }
 0x2ac   : > { %v1005_v46 = vmax.f32 %v971_v42, 0.0 }
 0x2ad   : > { %v1003_v48 = vmax.f32 %v963_v44, 0.0 }
 0x2ae   : > { %v1021_v49 = vpack.c.bf16 %v1005_v46, %v1004_v45 }
 0x2af   : > { %v1020_v50 = vpack.c.bf16 %v1003_v48, %v1002_v47 }
 0x2b1   : > { %1985 = vmatprep.mubr.bf16.mxu0 %v1020_v50 }
 0x2b2   : > { %1986 = vmatmul.mubr.bf16.gmra.mrb[60].mxu0 %v1021_v49 }
 0x34d   : > { %v1959_v53 = vpop.f32.mrb[32].mxu0 }
 0x34e   : > { %v1135_v54 = vadd.f32 %v1959_v53, %v2794_v52  ;;  %v1126_v0 = vpop.f32.mrb[33].mxu0 }
 0x34f   : > { %v1127_v55 = vadd.f32 %v2794_v52, %v1126_v0  ;;  %v1960_v56 = vpop.f32.mrb[34].mxu0 }
 0x350   : > { %v1138_v57 = vadd.f32 %v1960_v56, %v2794_v52  ;;  %v1129_v58 = vpop.f32.mrb[35].mxu0  ;;  %v1255_v60 = vmax.f32 %v1135_v54, 0.0 }
 0x351   : > { %v1130_v59 = vadd.f32 %v2794_v52, %v1129_v58  ;;  %v1253_v61 = vmax.f32 %v1127_v55, 0.0 }
 0x352   : > { %v1256_v7 = vmax.f32 %v1138_v57, 0.0 }
 0x353   : > { %v1254_v62 = vmax.f32 %v1130_v59, 0.0 }
 0x354   : > { %v1286_v63 = vpack.c.bf16 %v1256_v7, %v1255_v60 }
 0x355   : > { %v1285_v1 = vpack.c.bf16 %v1254_v62, %v1253_v61  ;;  %v1963_v2 = vpop.f32.mrb[36].mxu0 }
 0x356   : > { %v1151_v3 = vadd.f32 %v1963_v2, %v2794_v52  ;;  %v1142_v4 = vpop.f32.mrb[37].mxu0 }
 0x357   : > { %v1143_v5 = vadd.f32 %v2794_v52, %v1142_v4  ;;  %v1964_v6 = vpop.f32.mrb[38].mxu0  ;;  %2005 = vmatprep.mubr.bf16.mxu1 %v1285_v1 }
 0x358   : > { %v1154_v8 = vadd.f32 %v1964_v6, %v2794_v52  ;;  %v1145_v9 = vpop.f32.mrb[39].mxu0  ;;  %2006 = vmatmul.mubr.bf16.vlgmr.msra.gmra.mrb[32].mxu1 %v1286_v63  ;;  %v1259_v11 = vmax.f32 %v1151_v3, 0.0 }
 0x359   : > { %v1146_v10 = vadd.f32 %v2794_v52, %v1145_v9  ;;  %v1257_v13 = vmax.f32 %v1143_v5, 0.0 }
 0x35a   : > { %v1260_v12 = vmax.f32 %v1154_v8, 0.0 }
 0x35b   : > { %v1258_v14 = vmax.f32 %v1146_v10, 0.0 }
 0x35c   : > { %v1288_v15 = vpack.c.bf16 %v1260_v12, %v1259_v11 }
 0x35d   : > { %v1287_v16 = vpack.c.bf16 %v1258_v14, %v1257_v13  ;;  %v1967_v17 = vpop.f32.mrb[40].mxu0 }
 0x35e   : > { %v1167_v18 = vadd.f32 %v1967_v17, %v2794_v52  ;;  %v1158_v19 = vpop.f32.mrb[41].mxu0 }
 0x35f   : > { %v1159_v20 = vadd.f32 %v2794_v52, %v1158_v19  ;;  %v1968_v21 = vpop.f32.mrb[42].mxu0  ;;  %2009 = vmatprep.mubr.bf16.mxu1 %v1287_v16 }
 0x360   : > { %v1170_v22 = vadd.f32 %v1968_v21, %v2794_v52  ;;  %v1161_v23 = vpop.f32.mrb[43].mxu0  ;;  %2010 = vmatmul.mubr.bf16.gmra.mrb[36].mxu1 %v1288_v15  ;;  %v1263_v25 = vmax.f32 %v1167_v18, 0.0 }
 0x361   : > { %v1162_v24 = vadd.f32 %v2794_v52, %v1161_v23  ;;  %v1261_v27 = vmax.f32 %v1159_v20, 0.0 }
 0x362   : > { %v1264_v26 = vmax.f32 %v1170_v22, 0.0 }
 0x363   : > { %v1262_v28 = vmax.f32 %v1162_v24, 0.0 }
 0x364   : > { %v1290_v29 = vpack.c.bf16 %v1264_v26, %v1263_v25 }
 0x365   : > { %v1289_v30 = vpack.c.bf16 %v1262_v28, %v1261_v27  ;;  %v1971_v31 = vpop.f32.mrb[44].mxu0 }
 0x366   : > { %v1183_v32 = vadd.f32 %v1971_v31, %v2794_v52  ;;  %v1174_v33 = vpop.f32.mrb[45].mxu0 }
 0x367   : > { %v1175_v34 = vadd.f32 %v2794_v52, %v1174_v33  ;;  %v1972_v35 = vpop.f32.mrb[46].mxu0  ;;  %2013 = vmatprep.mubr.bf16.mxu1 %v1289_v30 }
 0x368   : > { %v1186_v36 = vadd.f32 %v1972_v35, %v2794_v52  ;;  %v1177_v37 = vpop.f32.mrb[47].mxu0  ;;  %2014 = vmatmul.mubr.bf16.gmra.mrb[40].mxu1 %v1290_v29  ;;  %v1267_v39 = vmax.f32 %v1183_v32, 0.0 }
 0x369   : > { %v1178_v38 = vadd.f32 %v2794_v52, %v1177_v37  ;;  %v1265_v41 = vmax.f32 %v1175_v34, 0.0 }
 0x36a   : > { %v1268_v40 = vmax.f32 %v1186_v36, 0.0 }
 0x36b   : > { %v1266_v42 = vmax.f32 %v1178_v38, 0.0  ;;  %v2831_v38 = vld [vmem:[%s2960_s8] ss:$0 sm:$0xff] }
 0x36c   : > { %v1292_v43 = vpack.c.bf16 %v1268_v40, %v1267_v39 }
 0x36d   : > { %v1291_v44 = vpack.c.bf16 %v1266_v42, %v1265_v41  ;;  %v1975_v45 = vpop.f32.mrb[48].mxu0 }
 0x36e   : > { %v1199_v46 = vadd.f32 %v1975_v45, %v2794_v52  ;;  %v1190_v47 = vpop.f32.mrb[49].mxu0 }
 0x36f   : > { %v1191_v48 = vadd.f32 %v2794_v52, %v1190_v47  ;;  %v1976_v49 = vpop.f32.mrb[50].mxu0  ;;  %2017 = vmatprep.mubr.bf16.mxu1 %v1291_v44 }
 0x370   : > { %v1202_v50 = vadd.f32 %v1976_v49, %v2794_v52  ;;  %v1193_v51 = vpop.f32.mrb[51].mxu0  ;;  %2018 = vmatmul.mubr.bf16.gmra.mrb[44].mxu1 %v1292_v43  ;;  %v1271_v54 = vmax.f32 %v1199_v46, 0.0 }
 0x371   : > { %v1194_v53 = vadd.f32 %v2794_v52, %v1193_v51  ;;  %v1269_v55 = vmax.f32 %v1191_v48, 0.0 }
 0x372   : > { %v1272_v0 = vmax.f32 %v1202_v50, 0.0 }
 0x373   : > { %v1270_v56 = vmax.f32 %v1194_v53, 0.0 }
 0x374   : > { %v1294_v57 = vpack.c.bf16 %v1272_v0, %v1271_v54 }
 0x375   : > { %v1293_v58 = vpack.c.bf16 %v1270_v56, %v1269_v55  ;;  %v1979_v59 = vpop.f32.mrb[52].mxu0 }
 0x376   : > { %v1215_v60 = vadd.f32 %v1979_v59, %v2794_v52  ;;  %v1206_v7 = vpop.f32.mrb[53].mxu0 }
 0x377   : > { %v1207_v61 = vadd.f32 %v2794_v52, %v1206_v7  ;;  %v1980_v62 = vpop.f32.mrb[54].mxu0  ;;  %2021 = vmatprep.mubr.bf16.mxu1 %v1293_v58 }
 0x378   : > { %v1218_v63 = vadd.f32 %v1980_v62, %v2794_v52  ;;  %v1209_v1 = vpop.f32.mrb[55].mxu0  ;;  %2022 = vmatmul.mubr.bf16.gmra.mrb[48].mxu1 %v1294_v57  ;;  %v1275_v3 = vmax.f32 %v1215_v60, 0.0 }
 0x379   : > { %v1210_v2 = vadd.f32 %v2794_v52, %v1209_v1  ;;  %v1273_v5 = vmax.f32 %v1207_v61, 0.0 }
 0x37a   : > { %v1276_v4 = vmax.f32 %v1218_v63, 0.0 }
 0x37b   : > { %v1274_v6 = vmax.f32 %v1210_v2, 0.0 }
 0x37c   : > { %v1296_v8 = vpack.c.bf16 %v1276_v4, %v1275_v3 }
 0x37d   : > { %v1295_v9 = vpack.c.bf16 %v1274_v6, %v1273_v5  ;;  %v1983_v10 = vpop.f32.mrb[56].mxu0 }
 0x37e   : > { %v1231_v11 = vadd.f32 %v1983_v10, %v2794_v52  ;;  %v1222_v12 = vpop.f32.mrb[57].mxu0 }
 0x37f   : > { %v1223_v13 = vadd.f32 %v2794_v52, %v1222_v12  ;;  %v1984_v14 = vpop.f32.mrb[58].mxu0  ;;  %2025 = vmatprep.mubr.bf16.mxu1 %v1295_v9 }
 0x380   : > { %v1234_v15 = vadd.f32 %v1984_v14, %v2794_v52  ;;  %v1225_v16 = vpop.f32.mrb[59].mxu0  ;;  %2026 = vmatmul.mubr.bf16.gmra.mrb[52].mxu1 %v1296_v8  ;;  %v1279_v18 = vmax.f32 %v1231_v11, 0.0 }
 0x381   : > { %v1226_v17 = vadd.f32 %v2794_v52, %v1225_v16  ;;  %v1277_v20 = vmax.f32 %v1223_v13, 0.0 }
 0x382   : > { %v1280_v19 = vmax.f32 %v1234_v15, 0.0 }
 0x383   : > { %v1278_v21 = vmax.f32 %v1226_v17, 0.0 }
 0x384   : > { %v1298_v22 = vpack.c.bf16 %v1280_v19, %v1279_v18 }
 0x385   : > { %v1297_v23 = vpack.c.bf16 %v1278_v21, %v1277_v20  ;;  %v1987_v24 = vpop.f32.mrb[60].mxu0 }
 0x386   : > { %v1247_v25 = vadd.f32 %v1987_v24, %v2794_v52  ;;  %v1238_v26 = vpop.f32.mrb[61].mxu0 }
 0x387   : > { %v1239_v27 = vadd.f32 %v2794_v52, %v1238_v26  ;;  %v1988_v28 = vpop.f32.mrb[62].mxu0  ;;  %2029 = vmatprep.mubr.bf16.mxu1 %v1297_v23 }
 0x388   : > { %v1250_v29 = vadd.f32 %v1988_v28, %v2794_v52  ;;  %v1241_v30 = vpop.f32.mrb[63].mxu0  ;;  %2030 = vmatmul.mubr.bf16.gmra.mrb[56].mxu1 %v1298_v22  ;;  %v1283_v32 = vmax.f32 %v1247_v25, 0.0 }
 0x389   : > { %v1242_v31 = vadd.f32 %v2794_v52, %v1241_v30  ;;  %v1281_v34 = vmax.f32 %v1239_v27, 0.0 }
 0x38a   : > { %v1284_v33 = vmax.f32 %v1250_v29, 0.0 }
 0x38b   : > { %v1282_v35 = vmax.f32 %v1242_v31, 0.0 }
 0x38c   : > { %v1300_v36 = vpack.c.bf16 %v1284_v33, %v1283_v32 }
 0x38d   : > { %v1299_v37 = vpack.c.bf16 %v1282_v35, %v1281_v34 }
 0x38f   : > { %2033 = vmatprep.mubr.bf16.mxu1 %v1299_v37 }
 0x390   : > { %2034 = vmatmul.mubr.bf16.gmra.mrb[60].mxu1 %v1300_v36 }
 0x42b   : > { %v2007_v39 = vpop.f32.mrb[32].mxu1 }
 0x42c   : > { %v1414_v40 = vadd.f32 %v2007_v39, %v2831_v38  ;;  %v1405_v41 = vpop.f32.mrb[33].mxu1 }
 0x42d   : > { %v1406_v42 = vadd.f32 %v2831_v38, %v1405_v41  ;;  %v2008_v52 = vpop.f32.mrb[34].mxu1 }
 0x42e   : > { %1534 = vst [vmem:[%s2837_s20 + $0x10] sm:$0xff] %v1414_v40  ;;  %v1417_v43 = vadd.f32 %v2008_v52, %v2831_v38  ;;  %v1408_v44 = vpop.f32.mrb[35].mxu1 }
 0x42f   : > { %1532 = vst [vmem:[%s2837_s20] sm:$0xff] %v1406_v42  ;;  %v1409_v45 = vadd.f32 %v2831_v38, %v1408_v44 }
 0x430   : > { %1535 = vst [vmem:[%s2837_s20 + $0x18] sm:$0xff] %v1417_v43 }
 0x431   : > { %1533 = vst [vmem:[%s2837_s20 + $0x8] sm:$0xff] %v1409_v45 }
 0x433   : > { %v2011_v46 = vpop.f32.mrb[36].mxu1 }
 0x434   : > { %v1430_v47 = vadd.f32 %v2011_v46, %v2831_v38  ;;  %v1421_v48 = vpop.f32.mrb[37].mxu1 }
 0x435   : > { %v1422_v49 = vadd.f32 %v2831_v38, %v1421_v48  ;;  %v2012_v50 = vpop.f32.mrb[38].mxu1 }
 0x436   : > { %1538 = vst [vmem:[%s2837_s20 + $0x30] sm:$0xff] %v1430_v47  ;;  %v1433_v51 = vadd.f32 %v2012_v50, %v2831_v38  ;;  %v1424_v53 = vpop.f32.mrb[39].mxu1 }
 0x437   : > { %1536 = vst [vmem:[%s2837_s20 + $0x20] sm:$0xff] %v1422_v49  ;;  %v1425_v54 = vadd.f32 %v2831_v38, %v1424_v53 }
 0x438   : > { %1539 = vst [vmem:[%s2837_s20 + $0x38] sm:$0xff] %v1433_v51 }
 0x439   : > { %1537 = vst [vmem:[%s2837_s20 + $0x28] sm:$0xff] %v1425_v54 }
 0x43b   : > { %v2015_v0 = vpop.f32.mrb[40].mxu1 }
 0x43c   : > { %v1446_v55 = vadd.f32 %v2015_v0, %v2831_v38  ;;  %v1437_v56 = vpop.f32.mrb[41].mxu1 }
 0x43d   : > { %v1438_v57 = vadd.f32 %v2831_v38, %v1437_v56  ;;  %v2016_v58 = vpop.f32.mrb[42].mxu1 }
 0x43e   : > { %1542 = vst [vmem:[%s2837_s20 + $0x50] sm:$0xff] %v1446_v55  ;;  %v1449_v59 = vadd.f32 %v2016_v58, %v2831_v38  ;;  %v1440_v60 = vpop.f32.mrb[43].mxu1 }
 0x43f   : > { %1540 = vst [vmem:[%s2837_s20 + $0x40] sm:$0xff] %v1438_v57  ;;  %v1441_v7 = vadd.f32 %v2831_v38, %v1440_v60 }
 0x440   : > { %1543 = vst [vmem:[%s2837_s20 + $0x58] sm:$0xff] %v1449_v59 }
 0x441   : > { %1541 = vst [vmem:[%s2837_s20 + $0x48] sm:$0xff] %v1441_v7 }
 0x443   : > { %v2019_v61 = vpop.f32.mrb[44].mxu1 }
 0x444   : > { %v1462_v62 = vadd.f32 %v2019_v61, %v2831_v38  ;;  %v1453_v63 = vpop.f32.mrb[45].mxu1 }
 0x445   : > { %v1454_v1 = vadd.f32 %v2831_v38, %v1453_v63  ;;  %v2020_v2 = vpop.f32.mrb[46].mxu1 }
 0x446   : > { %1546 = vst [vmem:[%s2837_s20 + $0x70] sm:$0xff] %v1462_v62  ;;  %v1465_v3 = vadd.f32 %v2020_v2, %v2831_v38  ;;  %v1456_v4 = vpop.f32.mrb[47].mxu1 }
 0x447   : > { %1544 = vst [vmem:[%s2837_s20 + $0x60] sm:$0xff] %v1454_v1  ;;  %v1457_v5 = vadd.f32 %v2831_v38, %v1456_v4 }
 0x448   : > { %1547 = vst [vmem:[%s2837_s20 + $0x78] sm:$0xff] %v1465_v3 }
 0x449   : > { %1545 = vst [vmem:[%s2837_s20 + $0x68] sm:$0xff] %v1457_v5 }
 0x44b   : > { %v2023_v6 = vpop.f32.mrb[48].mxu1 }
 0x44c   : > { %v1478_v8 = vadd.f32 %v2023_v6, %v2831_v38  ;;  %v1469_v9 = vpop.f32.mrb[49].mxu1 }
 0x44d   : > { %v1470_v10 = vadd.f32 %v2831_v38, %v1469_v9  ;;  %v2024_v11 = vpop.f32.mrb[50].mxu1 }
 0x44e   : > { %1550 = vst [vmem:[%s2837_s20 + $0x90] sm:$0xff] %v1478_v8  ;;  %v1481_v12 = vadd.f32 %v2024_v11, %v2831_v38  ;;  %v1472_v13 = vpop.f32.mrb[51].mxu1 }
 0x44f   : > { %1548 = vst [vmem:[%s2837_s20 + $0x80] sm:$0xff] %v1470_v10  ;;  %v1473_v14 = vadd.f32 %v2831_v38, %v1472_v13 }
 0x450   : > { %1551 = vst [vmem:[%s2837_s20 + $0x98] sm:$0xff] %v1481_v12 }
 0x451   : > { %1549 = vst [vmem:[%s2837_s20 + $0x88] sm:$0xff] %v1473_v14 }
 0x453   : > { %v2027_v15 = vpop.f32.mrb[52].mxu1 }
 0x454   : > { %v1494_v16 = vadd.f32 %v2027_v15, %v2831_v38  ;;  %v1485_v17 = vpop.f32.mrb[53].mxu1 }
 0x455   : > { %v1486_v18 = vadd.f32 %v2831_v38, %v1485_v17  ;;  %v2028_v19 = vpop.f32.mrb[54].mxu1 }
 0x456   : > { %1554 = vst [vmem:[%s2837_s20 + $0xb0] sm:$0xff] %v1494_v16  ;;  %v1497_v20 = vadd.f32 %v2028_v19, %v2831_v38  ;;  %v1488_v21 = vpop.f32.mrb[55].mxu1 }
 0x457   : > { %1552 = vst [vmem:[%s2837_s20 + $0xa0] sm:$0xff] %v1486_v18  ;;  %v1489_v22 = vadd.f32 %v2831_v38, %v1488_v21 }
 0x458   : > { %1555 = vst [vmem:[%s2837_s20 + $0xb8] sm:$0xff] %v1497_v20 }
 0x459   : > { %1553 = vst [vmem:[%s2837_s20 + $0xa8] sm:$0xff] %v1489_v22 }
 0x45b   : > { %v2031_v23 = vpop.f32.mrb[56].mxu1 }
 0x45c   : > { %v1510_v24 = vadd.f32 %v2031_v23, %v2831_v38  ;;  %v1501_v25 = vpop.f32.mrb[57].mxu1 }
 0x45d   : > { %v1502_v26 = vadd.f32 %v2831_v38, %v1501_v25  ;;  %v2032_v27 = vpop.f32.mrb[58].mxu1 }
 0x45e   : > { %1558 = vst [vmem:[%s2837_s20 + $0xd0] sm:$0xff] %v1510_v24  ;;  %v1513_v28 = vadd.f32 %v2032_v27, %v2831_v38  ;;  %v1504_v29 = vpop.f32.mrb[59].mxu1 }
 0x45f   : > { %1556 = vst [vmem:[%s2837_s20 + $0xc0] sm:$0xff] %v1502_v26  ;;  %v1505_v30 = vadd.f32 %v2831_v38, %v1504_v29 }
 0x460   : > { %1559 = vst [vmem:[%s2837_s20 + $0xd8] sm:$0xff] %v1513_v28 }
 0x461   : > { %1557 = vst [vmem:[%s2837_s20 + $0xc8] sm:$0xff] %v1505_v30 }
 0x463   : > { %v2035_v31 = vpop.f32.mrb[60].mxu1 }
 0x464   : > { %v1526_v32 = vadd.f32 %v2035_v31, %v2831_v38  ;;  %v1517_v33 = vpop.f32.mrb[61].mxu1 }
 0x465   : > { %v1518_v34 = vadd.f32 %v2831_v38, %v1517_v33  ;;  %v2036_v35 = vpop.f32.mrb[62].mxu1 }
 0x466   : > { %1562 = vst [vmem:[%s2837_s20 + $0xf0] sm:$0xff] %v1526_v32  ;;  %v1529_v36 = vadd.f32 %v2036_v35, %v2831_v38  ;;  %v1520_v37 = vpop.f32.mrb[63].mxu1 }
 0x467   : > { %1560 = vst [vmem:[%s2837_s20 + $0xe0] sm:$0xff] %v1518_v34  ;;  %v1521_v39 = vadd.f32 %v2831_v38, %v1520_v37 }
 0x468   : > { %1563 = vst [vmem:[%s2837_s20 + $0xf8] sm:$0xff] %v1529_v36 }
 0x469   : > { %1561 = vst [vmem:[%s2837_s20 + $0xe8] sm:$0xff] %v1521_v39 }
 0x46a   : > { %2317 = shalt.err (!%p2314_p13)
}
 0x46b   : > { %s2318_s22 = scalar_lea.hbm %s2902_s15, 4096  ;;  %s2322_s20 = scalar_lea.hbm %s2985_s29, 8192 }
 0x46c   : > { %p2319_p9 = scmp.ne.s32.totalorder %s2902_s15, %s2318_s22  ;;  %p2323_p4 = scmp.lt.u32.totalorder %s2902_s15, %s2985_s29 }
 0x46d   : > { %p2324_p8 = scmp.lt.u32.totalorder %s2322_s20, %s2318_s22  ;;  %p2326_p3 = scmp.lt.u32.totalorder %s2318_s22, %s2902_s15 }
 0x46e   : > { %p2320_p0 = pnand %p2319_p9, %p2613_p10 }
 0x46f   : > { %p2325_p6 = por %p2324_p8, %p2323_p4 }
 0x470   : > { %p2321_p11 = pneg %p2320_p0 }
 0x471   : > { %p2327_p5 = por %p2326_p3, %p2325_p6 }
 0x473   : > { %p2328_p7 = pnand %p2327_p5, %p2321_p11 }
 0x475   : > { %2331 = shalt.err (!%p2328_p7)
}
 0x476   : > { %s2390_s26 = smov 128   ;;  %s2391_s17 = smov 8  }
 0x477   : > { %2055 = dma.vmem_to_hbm [thread:$0]  (%p2613_p10), %s2904_s30, 4096, %s2902_s15, %s1565_s13, %s2390_s26, %s2390_s26, %s2391_s17  }
 0x478 PF: > { %s2986_s21 = sld [smem:[#allocation16_spill]]  ;;  %s2987_s19 = sld [smem:[#allocation17_spill]] }
 0x479   : > { %p2989_p1 = scmp.ge.s32.totalorder %s2378_s12, 2 }
 0x47e   : > { %s1593_s24 = sand.u32 1, %s2986_s21   ;;  %p2988_p12 = scmp.ne.s32.totalorder %s2987_s19, 0 }
 0x47f   : > { %s1594_s22 = scalar_lea.sflag [#allocation4], %s1593_s24 }
 0x480   : > { %p2075_p2 = pnand %p2989_p1, %p2988_p12 }
 0x482   : > { %2361 = dma.done.wait (!%p2075_p2), %s1594_s22, 4096  }
 0x483   : > { %2363 = vsyncadd (!%p2075_p2), %s1594_s22, 4294963200  ;;  %p24_p13 = scmp.ge.s32.totalorder %s2603_s14, 4   ;;  %s2990_s30 = smov %s2370_s10 }
 0x484   : > { %s2991_s10 = smov %s2374_s11  ;;  %s2992_s11 = smov %s2619_s28 }
 0x485   : > { %s2993_s12 = smov %s2603_s14  ;;  %26 = sbr.rel (!%p24_p13) target bundleno = 9 (0x9), region = 117 }
 0x48c   :  { %1599 = vsyncpa [#allocation3], 1 }
 0x48d   :  { %1601 = vsyncpa [#allocation3 + $0x1], 1 }
 0x48e   :  { %1602 = vsyncpa [#allocation6], 1 }
 0x48f   :  { %1603 = vsyncpa [#allocation9], 1 }
 0x490   :  { %1604 = vsyncpa [#allocation4], 1 }
 0x491   :  { %1606 = vsyncpa [#allocation4 + $0x1], 1 }

</bundles_post_ra>
